<compile_context>
chip_gen: v7x
topology: tpu7x:2x2x1
jax: 0.10.0
libtpu: 0.0.40
codegen_flags: <defaults>
</compile_context>

<pallas_src>
import jax
import jax.numpy as jnp
from jax.experimental import pallas as pl
from jax.experimental.pallas import tpu as pltpu

LANE = 128
_TAPS = tuple((kh, kw) for kh in range(3) for kw in range(3))


def _round_up(x, m):
    return (x + m - 1) // m * m


def _resident_spec(shape):
    """Spec for an operand that is identical for every grid step.

    Constant index_map -> DMA'd once, stays resident; single buffering avoids
    wasting VMEM on a second copy that is never refilled.
    """
    index_map = lambda n: (0,) * len(shape)
    try:
        return pl.BlockSpec(shape, index_map, pipeline_mode=pl.Buffered(1))
    except (TypeError, AttributeError):   # older jax: fall back to default
        return pl.BlockSpec(shape, index_map)


def _vmem_limit_bytes():
    try:
        cap = pltpu.get_tpu_info().vmem_capacity_bytes
    except Exception:
        cap = 64 * 1024 * 1024            # conservative (v7x) fallback
    # 3/4 of physical: ~48 MiB on v7x (64 MiB), ~96 MiB on v5e/v6e (128 MiB).
    return int(min(96 * 1024 * 1024, cap * 3 // 4))


# ------------------------------ Pallas kernel --------------------------------

def _make_fused_block_kernel(stride, Ho, Wo, Ct, cp, downsample):
    """Fused BasicBlock kernel for one image.

    xs_ref : (Hb, Wb, stride*stride*Ct) bf16  padded + space-to-depth input
    w1_ref : (9*Ct, cp) bf16    b1_ref : (1, cp) f32   (BN1 folded)
    w2_ref : (9*cp, cp) bf16    b2_ref : (1, cp) f32   (BN2 folded)
    [wsc_ref: (Ct, cp) bf16     bsc_ref: (1, cp) f32]  (downsample only)
    o_ref  : (Ho, Wo, cp) bf16
    out1p  : VMEM scratch (Ho+2, Wo+2, cp) bf16 -- conv1 output with zero halo
    """
    M = Ho * Wo

    def accum_conv3x3(window_fn, w_ref, ck):
        # 9 tap matmuls (in-VMEM im2col), f32 accumulation.
        acc = None
        for t, (kh, kw) in enumerate(_TAPS):
            win = window_fn(kh, kw).reshape(M, ck)
            part = jnp.dot(win, w_ref[t * ck:(t + 1) * ck, :],
                           preferred_element_type=jnp.float32)
            acc = part if acc is None else acc + part
        return acc

    def kernel(xs_ref, w1_ref, b1_ref, w2_ref, b2_ref, *rest):
        if downsample:
            wsc_ref, bsc_ref, o_ref, out1p_ref = rest
        else:
            o_ref, out1p_ref = rest

        # ---- conv1 + bn1 + relu: taps are contiguous windows of the
        #      space-to-depth input (stride handled by phase/channel offset).
        def x_win(kh, kw):
            ah, ph = divmod(kh, stride)
            aw, pw = divmod(kw, stride)
            c0 = (ph * stride + pw) * Ct
            return xs_ref[ah:ah + Ho, aw:aw + Wo, c0:c0 + Ct]

        out1 = jnp.maximum(accum_conv3x3(x_win, w1_ref, Ct) + b1_ref[...], 0.0)

        # Stage conv1's output (with a zero halo) in VMEM so conv2's im2col is
        # also just shifted windows -- out1 never touches HBM.
        out1p_ref[...] = jnp.zeros_like(out1p_ref)
        out1p_ref[1:Ho + 1, 1:Wo + 1, :] = (
            out1.reshape(Ho, Wo, cp).astype(out1p_ref.dtype))

        # ---- conv2 + bn2 ----
        def o1_win(kh, kw):
            return out1p_ref[kh:kh + Ho, kw:kw + Wo, :]

        acc = accum_conv3x3(o1_win, w2_ref, cp) + b2_ref[...]

        # ---- shortcut: the center tap of the strided input grid.
        ah, ph = divmod(1, stride)
        aw, pw = divmod(1, stride)
        c0 = (ph * stride + pw) * Ct
        sc = xs_ref[ah:ah + Ho, aw:aw + Wo, c0:c0 + Ct].reshape(M, Ct)
        if downsample:          # 1x1 conv + folded BN
            acc = acc + jnp.dot(sc, wsc_ref[...],
                                preferred_element_type=jnp.float32) + bsc_ref[...]
        else:                   # identity residual add (Ct == cp here)
            acc = acc + sc.astype(jnp.float32)

        o_ref[...] = jnp.maximum(acc, 0.0).reshape(Ho, Wo, cp).astype(o_ref.dtype)

    return kernel


# ------------------------------ JAX wrapper ----------------------------------

def _fold_bn(p):
    scale = p["gamma"] / jnp.sqrt(p["var"] + p["eps"])
    shift = p["beta"] - p["mean"] * scale
    return scale, shift


def basic_block_forward(x_nchw, params, stride):
    """Pallas implementation of BasicBlock.forward (eval-mode BN)."""
    N, Cin, H, W = x_nchw.shape
    planes = params["w1"].shape[0]
    downsample = (stride != 1) or (Cin != planes)

    cp = _round_up(planes, LANE)        # lane-dense output channels
    Ct = _round_up(Cin, LANE)           # lane-dense per-tap contraction width
    Ho = (H - 1) // stride + 1
    Wo = (W - 1) // stride + 1

    # Input: NCHW -> NHWC, spatial pad 1, channel pad to Ct, bf16, then
    # space-to-depth by `stride` so every in-kernel tap is contiguous.
    x = jnp.transpose(x_nchw, (0, 2, 3, 1)).astype(jnp.float32)
    xp = jnp.pad(x, ((0, 0), (1, 1), (1, 1), (0, Ct - Cin)))
    if stride > 1:
        Hp, Wp = xp.shape[1], xp.shape[2]
        Hb, Wb = -(-Hp // stride), -(-Wp // stride)
        xp = jnp.pad(xp, ((0, 0), (0, Hb * stride - Hp),
                          (0, Wb * stride - Wp), (0, 0)))
        xs = xp.reshape(N, Hb, stride, Wb, stride, Ct)
        xs = xs.transpose(0, 1, 3, 2, 4, 5).reshape(N, Hb, Wb, stride * stride * Ct)
    else:
        Hb, Wb = H + 2, W + 2
        xs = xp
    xs = xs.astype(jnp.bfloat16)
    Cxs = stride * stride * Ct

    # Fold eval-mode BN into the weights, pad to lane-dense shapes, cast bf16.
    s1, b1 = _fold_bn(params["bn1"])
    w1 = jnp.transpose(params["w1"], (2, 3, 1, 0)) * s1            # (3,3,Cin,planes)
    w1 = jnp.pad(w1, ((0, 0), (0, 0), (0, Ct - Cin), (0, cp - planes)))
    w1 = w1.reshape(9 * Ct, cp).astype(jnp.bfloat16)
    b1 = jnp.pad(b1, (0, cp - planes)).reshape(1, cp).astype(jnp.float32)

    s2, b2 = _fold_bn(params["bn2"])
    w2 = jnp.transpose(params["w2"], (2, 3, 1, 0)) * s2            # (3,3,planes,planes)
    w2 = jnp.pad(w2, ((0, 0), (0, 0), (0, cp - planes), (0, cp - planes)))
    w2 = w2.reshape(9 * cp, cp).astype(jnp.bfloat16)
    b2 = jnp.pad(b2, (0, cp - planes)).reshape(1, cp).astype(jnp.float32)

    inputs = [xs, w1, b1, w2, b2]
    in_specs = [
        pl.BlockSpec((None, Hb, Wb, Cxs), lambda n: (n, 0, 0, 0)),  # per-image stream
        _resident_spec((9 * Ct, cp)),
        _resident_spec((1, cp)),
        _resident_spec((9 * cp, cp)),
        _resident_spec((1, cp)),
    ]
    flops = 2 * Ho * Wo * (9 * Ct + 9 * cp) * cp
    if downsample:
        ssc, bsc = _fold_bn(params["bnsc"])
        wsc = jnp.transpose(params["wsc"].reshape(planes, Cin), (1, 0)) * ssc
        wsc = jnp.pad(wsc, ((0, Ct - Cin), (0, cp - planes))).astype(jnp.bfloat16)
        bsc = jnp.pad(bsc, (0, cp - planes)).reshape(1, cp).astype(jnp.float32)
        inputs += [wsc, bsc]
        in_specs += [_resident_spec((Ct, cp)), _resident_spec((1, cp))]
        flops += 2 * Ho * Wo * Ct * cp

    kernel = _make_fused_block_kernel(stride, Ho, Wo, Ct, cp, downsample)
    w_bytes = sum(int(a.size) * a.dtype.itemsize for a in inputs[1:])

    out = pl.pallas_call(
        kernel,
        out_shape=jax.ShapeDtypeStruct((N, Ho, Wo, cp), jnp.bfloat16),
        grid=(N,),
        in_specs=in_specs,
        out_specs=pl.BlockSpec((None, Ho, Wo, cp), lambda n: (n, 0, 0, 0)),
        scratch_shapes=[pltpu.VMEM((Ho + 2, Wo + 2, cp), jnp.bfloat16)],
        compiler_params=pltpu.CompilerParams(
            dimension_semantics=("parallel",),
            vmem_limit_bytes=_vmem_limit_bytes()),
        cost_estimate=pl.CostEstimate(
            flops=N * flops, transcendentals=0,
            bytes_accessed=int(xs.size) * 2 + w_bytes + N * Ho * Wo * cp * 2),
    )(*inputs)

    out = out[:, :, :, :planes].astype(jnp.float32)
    return jnp.transpose(out, (0, 3, 1, 2))                        # back to NCHW


# ------------------------------ params & reference ---------------------------

def init_params(key, in_planes, planes, stride):
    ks = jax.random.split(key, 16)

    def bn_params(k, C):
        kg, kb, km, kv = jax.random.split(k, 4)
        return dict(gamma=jax.random.uniform(kg, (C,), jnp.float32, 0.5, 1.5),
                    beta=0.1 * jax.random.normal(kb, (C,), jnp.float32),
                    mean=0.1 * jax.random.normal(km, (C,), jnp.float32),
                    var=jax.random.uniform(kv, (C,), jnp.float32, 0.5, 1.5),
                    eps=1e-5)

    params = dict(
        w1=0.1 * jax.random.normal(ks[0], (planes, in_planes, 3, 3), jnp.float32),
        bn1=bn_params(ks[1], planes),
        w2=0.1 * jax.random.normal(ks[2], (planes, planes, 3, 3), jnp.float32),
        bn2=bn_params(ks[3], planes),
    )
    if stride != 1 or in_planes != planes:
        params["wsc"] = 0.1 * jax.random.normal(ks[4], (planes, in_planes, 1, 1),
                                                jnp.float32)
        params["bnsc"] = bn_params(ks[5], planes)
    return params


def reference_forward(x_nchw, params, stride):
    """Pure-JAX f32 reference (lax.conv) with identical eval-mode BN semantics."""
    x = jnp.transpose(x_nchw, (0, 2, 3, 1)).astype(jnp.float32)

    def conv(h, w_oihw, s, pad):
        w = jnp.transpose(w_oihw, (2, 3, 1, 0))        # HWIO
        return jax.lax.conv_general_dilated(
            h, w, (s, s), pad, dimension_numbers=("NHWC", "HWIO", "NHWC"))

    def bn(h, p):
        scale = p["gamma"] / jnp.sqrt(p["var"] + p["eps"])
        shift = p["beta"] - p["mean"] * scale
        return h * scale + shift

    planes = params["w1"].shape[0]
    out = jax.nn.relu(bn(conv(x, params["w1"], stride, ((1, 1), (1, 1))), params["bn1"]))
    out = bn(conv(out, params["w2"], 1, ((1, 1), (1, 1))), params["bn2"])
    if stride != 1 or x.shape[-1] != planes:
        sc = bn(conv(x, params["wsc"], stride, ((0, 0), (0, 0))), params["bnsc"])
    else:
        sc = x
    out = jax.nn.relu(out + sc)
    return jnp.transpose(out, (0, 3, 1, 2))


# ------------------------------ main ------------------------------------------

if __name__ == "__main__":
    key = jax.random.PRNGKey(0)
    kx, kp, kx2, kp2 = jax.random.split(key, 4)

    fwd = jax.jit(basic_block_forward, static_argnames=("stride",))

    # Config 1: downsample shortcut (stride 2, channel expansion).
    N, Cin, H, W = 2, 4, 16, 16                       # x: NCHW, PyTorch layout
    planes, stride = 8, 2
    x = jax.random.normal(kx, (N, Cin, H, W), jnp.float32)
    params = init_params(kp, Cin, planes, stride)
    out = jax.block_until_ready(fwd(x, params, stride=stride))
    ref = reference_forward(x, params, stride)
    assert out.shape == (N, planes, H // stride, W // stride), out.shape
    # bf16 MXU operands vs. pure-f32 reference -> tolerance reflects bf16 rounding.
    assert jnp.allclose(out, ref, atol=5e-2, rtol=5e-2), \
        float(jnp.max(jnp.abs(out - ref)))

    # Config 2: identity shortcut (stride 1, same channels) -> direct-add path.
    N2, C2, H2, W2 = 2, 8, 16, 16
    x2 = jax.random.normal(kx2, (N2, C2, H2, W2), jnp.float32)
    params2 = init_params(kp2, C2, C2, 1)
    out2 = jax.block_until_ready(fwd(x2, params2, stride=1))
    ref2 = reference_forward(x2, params2, 1)
    assert out2.shape == (N2, C2, H2, W2), out2.shape
    assert jnp.allclose(out2, ref2, atol=5e-2, rtol=5e-2), \
        float(jnp.max(jnp.abs(out2 - ref2)))

    print("KERNEL_OK")
</pallas_src>

<mosaic_0001>
module attributes {stable_mosaic.version = 11 : i64} {
  func.func @kernel(%arg0: i32, %arg1: memref<1x9x9x512xbf16, #tpu.memory_space<vmem>>, %arg2: memref<1152x128xbf16, #tpu.memory_space<vmem>>, %arg3: memref<1x128xf32, #tpu.memory_space<vmem>>, %arg4: memref<1152x128xbf16, #tpu.memory_space<vmem>>, %arg5: memref<1x128xf32, #tpu.memory_space<vmem>>, %arg6: memref<128x128xbf16, #tpu.memory_space<vmem>>, %arg7: memref<1x128xf32, #tpu.memory_space<vmem>>, %arg8: memref<1x8x8x128xbf16, #tpu.memory_space<vmem>>, %arg9: memref<10x10x128xbf16, #tpu.memory_space<vmem>>) attributes {dimension_semantics = [#tpu.dimension_semantics<parallel>], iteration_bounds = array<i64: 2>, scalar_prefetch = 0 : i64, scratch_operands = 1 : i64, tpu.core_type = #tpu.core_type<tc>, window_params = [{transform_indices = @transform_0, window_bounds = array<i64: 1, 9, 9, 512>}, {pipeline_mode = #tpu.pipeline_mode<synchronous>, transform_indices = @transform_1, window_bounds = array<i64: 1152, 128>}, {pipeline_mode = #tpu.pipeline_mode<synchronous>, transform_indices = @transform_2, window_bounds = array<i64: 1, 128>}, {pipeline_mode = #tpu.pipeline_mode<synchronous>, transform_indices = @transform_3, window_bounds = array<i64: 1152, 128>}, {pipeline_mode = #tpu.pipeline_mode<synchronous>, transform_indices = @transform_4, window_bounds = array<i64: 1, 128>}, {pipeline_mode = #tpu.pipeline_mode<synchronous>, transform_indices = @transform_5, window_bounds = array<i64: 128, 128>}, {pipeline_mode = #tpu.pipeline_mode<synchronous>, transform_indices = @transform_6, window_bounds = array<i64: 1, 128>}, {transform_indices = @transform_7, window_bounds = array<i64: 1, 8, 8, 128>}]} {
    %c0 = arith.constant 0 : index
    %c0_0 = arith.constant 0 : index
    %c0_1 = arith.constant 0 : index
    %c0_2 = arith.constant 0 : index
    %0 = vector.load %arg1[%c0, %c0_0, %c0_1, %c0_2] : memref<1x9x9x512xbf16, #tpu.memory_space<vmem>>, vector<1x8x8x128xbf16>
    %1 = vector.shape_cast %0 : vector<1x8x8x128xbf16> to vector<8x8x128xbf16>
    %2 = vector.shape_cast %1 : vector<8x8x128xbf16> to vector<64x128xbf16>
    %c0_3 = arith.constant 0 : index
    %c0_4 = arith.constant 0 : index
    %3 = vector.load %arg2[%c0_3, %c0_4] : memref<1152x128xbf16, #tpu.memory_space<vmem>>, vector<128x128xbf16>
    %cst = arith.constant dense<0.000000e+00> : vector<64x128xf32>
    %4 = tpu.matmul %2, %3, %cst {dimension_numbers = #tpu.dot_dimension_numbers<[1], [0], [0], [1], [0, 0, 1, 1], [], []>} : vector<64x128xbf16>, vector<128x128xbf16>, vector<64x128xf32> -> vector<64x128xf32>
    %c0_5 = arith.constant 0 : index
    %c0_6 = arith.constant 0 : index
    %c0_7 = arith.constant 0 : index
    %c128 = arith.constant 128 : index
    %5 = vector.load %arg1[%c0_5, %c0_6, %c0_7, %c128] : memref<1x9x9x512xbf16, #tpu.memory_space<vmem>>, vector<1x8x8x128xbf16>
    %6 = vector.shape_cast %5 : vector<1x8x8x128xbf16> to vector<8x8x128xbf16>
    %7 = vector.shape_cast %6 : vector<8x8x128xbf16> to vector<64x128xbf16>
    %c128_8 = arith.constant 128 : index
    %c0_9 = arith.constant 0 : index
    %8 = vector.load %arg2[%c128_8, %c0_9] : memref<1152x128xbf16, #tpu.memory_space<vmem>>, vector<128x128xbf16>
    %cst_10 = arith.constant dense<0.000000e+00> : vector<64x128xf32>
    %9 = tpu.matmul %7, %8, %cst_10 {dimension_numbers = #tpu.dot_dimension_numbers<[1], [0], [0], [1], [0, 0, 1, 1], [], []>} : vector<64x128xbf16>, vector<128x128xbf16>, vector<64x128xf32> -> vector<64x128xf32>
    %10 = arith.addf %4, %9 : vector<64x128xf32>
    %c0_11 = arith.constant 0 : index
    %c0_12 = arith.constant 0 : index
    %c1 = arith.constant 1 : index
    %c0_13 = arith.constant 0 : index
    %11 = vector.load %arg1[%c0_11, %c0_12, %c1, %c0_13] : memref<1x9x9x512xbf16, #tpu.memory_space<vmem>>, vector<1x8x8x128xbf16>
    %12 = vector.shape_cast %11 : vector<1x8x8x128xbf16> to vector<8x8x128xbf16>
    %13 = vector.shape_cast %12 : vector<8x8x128xbf16> to vector<64x128xbf16>
    %c256 = arith.constant 256 : index
    %c0_14 = arith.constant 0 : index
    %14 = vector.load %arg2[%c256, %c0_14] : memref<1152x128xbf16, #tpu.memory_space<vmem>>, vector<128x128xbf16>
    %cst_15 = arith.constant dense<0.000000e+00> : vector<64x128xf32>
    %15 = tpu.matmul %13, %14, %cst_15 {dimension_numbers = #tpu.dot_dimension_numbers<[1], [0], [0], [1], [0, 0, 1, 1], [], []>} : vector<64x128xbf16>, vector<128x128xbf16>, vector<64x128xf32> -> vector<64x128xf32>
    %16 = arith.addf %10, %15 : vector<64x128xf32>
    %c0_16 = arith.constant 0 : index
    %c0_17 = arith.constant 0 : index
    %c0_18 = arith.constant 0 : index
    %c256_19 = arith.constant 256 : index
    %17 = vector.load %arg1[%c0_16, %c0_17, %c0_18, %c256_19] : memref<1x9x9x512xbf16, #tpu.memory_space<vmem>>, vector<1x8x8x128xbf16>
    %18 = vector.shape_cast %17 : vector<1x8x8x128xbf16> to vector<8x8x128xbf16>
    %19 = vector.shape_cast %18 : vector<8x8x128xbf16> to vector<64x128xbf16>
    %c384 = arith.constant 384 : index
    %c0_20 = arith.constant 0 : index
    %20 = vector.load %arg2[%c384, %c0_20] : memref<1152x128xbf16, #tpu.memory_space<vmem>>, vector<128x128xbf16>
    %cst_21 = arith.constant dense<0.000000e+00> : vector<64x128xf32>
    %21 = tpu.matmul %19, %20, %cst_21 {dimension_numbers = #tpu.dot_dimension_numbers<[1], [0], [0], [1], [0, 0, 1, 1], [], []>} : vector<64x128xbf16>, vector<128x128xbf16>, vector<64x128xf32> -> vector<64x128xf32>
    %22 = arith.addf %16, %21 : vector<64x128xf32>
    %c0_22 = arith.constant 0 : index
    %c0_23 = arith.constant 0 : index
    %c0_24 = arith.constant 0 : index
    %c384_25 = arith.constant 384 : index
    %23 = vector.load %arg1[%c0_22, %c0_23, %c0_24, %c384_25] : memref<1x9x9x512xbf16, #tpu.memory_space<vmem>>, vector<1x8x8x128xbf16>
    %24 = vector.shape_cast %23 : vector<1x8x8x128xbf16> to vector<8x8x128xbf16>
    %25 = vector.shape_cast %24 : vector<8x8x128xbf16> to vector<64x128xbf16>
    %c512 = arith.constant 512 : index
    %c0_26 = arith.constant 0 : index
    %26 = vector.load %arg2[%c512, %c0_26] : memref<1152x128xbf16, #tpu.memory_space<vmem>>, vector<128x128xbf16>
    %cst_27 = arith.constant dense<0.000000e+00> : vector<64x128xf32>
    %27 = tpu.matmul %25, %26, %cst_27 {dimension_numbers = #tpu.dot_dimension_numbers<[1], [0], [0], [1], [0, 0, 1, 1], [], []>} : vector<64x128xbf16>, vector<128x128xbf16>, vector<64x128xf32> -> vector<64x128xf32>
    %28 = arith.addf %22, %27 : vector<64x128xf32>
    %c0_28 = arith.constant 0 : index
    %c0_29 = arith.constant 0 : index
    %c1_30 = arith.constant 1 : index
    %c256_31 = arith.constant 256 : index
    %29 = vector.load %arg1[%c0_28, %c0_29, %c1_30, %c256_31] : memref<1x9x9x512xbf16, #tpu.memory_space<vmem>>, vector<1x8x8x128xbf16>
    %30 = vector.shape_cast %29 : vector<1x8x8x128xbf16> to vector<8x8x128xbf16>
    %31 = vector.shape_cast %30 : vector<8x8x128xbf16> to vector<64x128xbf16>
    %c640 = arith.constant 640 : index
    %c0_32 = arith.constant 0 : index
    %32 = vector.load %arg2[%c640, %c0_32] : memref<1152x128xbf16, #tpu.memory_space<vmem>>, vector<128x128xbf16>
    %cst_33 = arith.constant dense<0.000000e+00> : vector<64x128xf32>
    %33 = tpu.matmul %31, %32, %cst_33 {dimension_numbers = #tpu.dot_dimension_numbers<[1], [0], [0], [1], [0, 0, 1, 1], [], []>} : vector<64x128xbf16>, vector<128x128xbf16>, vector<64x128xf32> -> vector<64x128xf32>
    %34 = arith.addf %28, %33 : vector<64x128xf32>
    %c0_34 = arith.constant 0 : index
    %c1_35 = arith.constant 1 : index
    %c0_36 = arith.constant 0 : index
    %c0_37 = arith.constant 0 : index
    %35 = vector.load %arg1[%c0_34, %c1_35, %c0_36, %c0_37] : memref<1x9x9x512xbf16, #tpu.memory_space<vmem>>, vector<1x8x8x128xbf16>
    %36 = vector.shape_cast %35 : vector<1x8x8x128xbf16> to vector<8x8x128xbf16>
    %37 = vector.shape_cast %36 : vector<8x8x128xbf16> to vector<64x128xbf16>
    %c768 = arith.constant 768 : index
    %c0_38 = arith.constant 0 : index
    %38 = vector.load %arg2[%c768, %c0_38] : memref<1152x128xbf16, #tpu.memory_space<vmem>>, vector<128x128xbf16>
    %cst_39 = arith.constant dense<0.000000e+00> : vector<64x128xf32>
    %39 = tpu.matmul %37, %38, %cst_39 {dimension_numbers = #tpu.dot_dimension_numbers<[1], [0], [0], [1], [0, 0, 1, 1], [], []>} : vector<64x128xbf16>, vector<128x128xbf16>, vector<64x128xf32> -> vector<64x128xf32>
    %40 = arith.addf %34, %39 : vector<64x128xf32>
    %c0_40 = arith.constant 0 : index
    %c1_41 = arith.constant 1 : index
    %c0_42 = arith.constant 0 : index
    %c128_43 = arith.constant 128 : index
    %41 = vector.load %arg1[%c0_40, %c1_41, %c0_42, %c128_43] : memref<1x9x9x512xbf16, #tpu.memory_space<vmem>>, vector<1x8x8x128xbf16>
    %42 = vector.shape_cast %41 : vector<1x8x8x128xbf16> to vector<8x8x128xbf16>
    %43 = vector.shape_cast %42 : vector<8x8x128xbf16> to vector<64x128xbf16>
    %c896 = arith.constant 896 : index
    %c0_44 = arith.constant 0 : index
    %44 = vector.load %arg2[%c896, %c0_44] : memref<1152x128xbf16, #tpu.memory_space<vmem>>, vector<128x128xbf16>
    %cst_45 = arith.constant dense<0.000000e+00> : vector<64x128xf32>
    %45 = tpu.matmul %43, %44, %cst_45 {dimension_numbers = #tpu.dot_dimension_numbers<[1], [0], [0], [1], [0, 0, 1, 1], [], []>} : vector<64x128xbf16>, vector<128x128xbf16>, vector<64x128xf32> -> vector<64x128xf32>
    %46 = arith.addf %40, %45 : vector<64x128xf32>
    %c0_46 = arith.constant 0 : index
    %c1_47 = arith.constant 1 : index
    %c1_48 = arith.constant 1 : index
    %c0_49 = arith.constant 0 : index
    %47 = vector.load %arg1[%c0_46, %c1_47, %c1_48, %c0_49] : memref<1x9x9x512xbf16, #tpu.memory_space<vmem>>, vector<1x8x8x128xbf16>
    %48 = vector.shape_cast %47 : vector<1x8x8x128xbf16> to vector<8x8x128xbf16>
    %49 = vector.shape_cast %48 : vector<8x8x128xbf16> to vector<64x128xbf16>
    %c1024 = arith.constant 1024 : index
    %c0_50 = arith.constant 0 : index
    %50 = vector.load %arg2[%c1024, %c0_50] : memref<1152x128xbf16, #tpu.memory_space<vmem>>, vector<128x128xbf16>
    %cst_51 = arith.constant dense<0.000000e+00> : vector<64x128xf32>
    %51 = tpu.matmul %49, %50, %cst_51 {dimension_numbers = #tpu.dot_dimension_numbers<[1], [0], [0], [1], [0, 0, 1, 1], [], []>} : vector<64x128xbf16>, vector<128x128xbf16>, vector<64x128xf32> -> vector<64x128xf32>
    %52 = arith.addf %46, %51 : vector<64x128xf32>
    %c0_52 = arith.constant 0 : index
    %c0_53 = arith.constant 0 : index
    %53 = vector.load %arg3[%c0_52, %c0_53] : memref<1x128xf32, #tpu.memory_space<vmem>>, vector<1x128xf32>
    %54 = vector.broadcast %53 : vector<1x128xf32> to vector<64x128xf32>
    %55 = arith.addf %52, %54 : vector<64x128xf32>
    %cst_54 = arith.constant 0.000000e+00 : f32
    %56 = vector.broadcast %cst_54 : f32 to vector<64x128xf32>
    %57 = arith.maximumf %55, %56 : vector<64x128xf32>
    %cst_55 = arith.constant 0.000000e+00 : bf16
    %58 = vector.broadcast %cst_55 : bf16 to vector<10x10x128xbf16>
    %c0_56 = arith.constant 0 : index
    %c0_57 = arith.constant 0 : index
    %c0_58 = arith.constant 0 : index
    %59 = vector.load %arg9[%c0_56, %c0_57, %c0_58] : memref<10x10x128xbf16, #tpu.memory_space<vmem>>, vector<10x10x128xbf16>
    tpu.vector_store %arg9[%c0_56, %c0_57, %c0_58], %58 {strides = array<i32>} : memref<10x10x128xbf16, #tpu.memory_space<vmem>>, vector<10x10x128xbf16>,
    %60 = vector.shape_cast %57 : vector<64x128xf32> to vector<8x8x128xf32>
    %61 = arith.truncf %60 : vector<8x8x128xf32> to vector<8x8x128xbf16>
    %c1_59 = arith.constant 1 : index
    %c1_60 = arith.constant 1 : index
    %c0_61 = arith.constant 0 : index
    %62 = vector.load %arg9[%c1_59, %c1_60, %c0_61] : memref<10x10x128xbf16, #tpu.memory_space<vmem>>, vector<8x8x128xbf16>
    tpu.vector_store %arg9[%c1_59, %c1_60, %c0_61], %61 {strides = array<i32>} : memref<10x10x128xbf16, #tpu.memory_space<vmem>>, vector<8x8x128xbf16>,
    %c0_62 = arith.constant 0 : index
    %c0_63 = arith.constant 0 : index
    %c0_64 = arith.constant 0 : index
    %63 = vector.load %arg9[%c0_62, %c0_63, %c0_64] : memref<10x10x128xbf16, #tpu.memory_space<vmem>>, vector<8x8x128xbf16>
    %64 = vector.shape_cast %63 : vector<8x8x128xbf16> to vector<64x128xbf16>
    %c0_65 = arith.constant 0 : index
    %c0_66 = arith.constant 0 : index
    %65 = vector.load %arg4[%c0_65, %c0_66] : memref<1152x128xbf16, #tpu.memory_space<vmem>>, vector<128x128xbf16>
    %cst_67 = arith.constant dense<0.000000e+00> : vector<64x128xf32>
    %66 = tpu.matmul %64, %65, %cst_67 {dimension_numbers = #tpu.dot_dimension_numbers<[1], [0], [0], [1], [0, 0, 1, 1], [], []>} : vector<64x128xbf16>, vector<128x128xbf16>, vector<64x128xf32> -> vector<64x128xf32>
    %c0_68 = arith.constant 0 : index
    %c1_69 = arith.constant 1 : index
    %c0_70 = arith.constant 0 : index
    %67 = vector.load %arg9[%c0_68, %c1_69, %c0_70] : memref<10x10x128xbf16, #tpu.memory_space<vmem>>, vector<8x8x128xbf16>
    %68 = vector.shape_cast %67 : vector<8x8x128xbf16> to vector<64x128xbf16>
    %c128_71 = arith.constant 128 : index
    %c0_72 = arith.constant 0 : index
    %69 = vector.load %arg4[%c128_71, %c0_72] : memref<1152x128xbf16, #tpu.memory_space<vmem>>, vector<128x128xbf16>
    %cst_73 = arith.constant dense<0.000000e+00> : vector<64x128xf32>
    %70 = tpu.matmul %68, %69, %cst_73 {dimension_numbers = #tpu.dot_dimension_numbers<[1], [0], [0], [1], [0, 0, 1, 1], [], []>} : vector<64x128xbf16>, vector<128x128xbf16>, vector<64x128xf32> -> vector<64x128xf32>
    %71 = arith.addf %66, %70 : vector<64x128xf32>
    %c0_74 = arith.constant 0 : index
    %c2 = arith.constant 2 : index
    %c0_75 = arith.constant 0 : index
    %72 = vector.load %arg9[%c0_74, %c2, %c0_75] : memref<10x10x128xbf16, #tpu.memory_space<vmem>>, vector<8x8x128xbf16>
    %73 = vector.shape_cast %72 : vector<8x8x128xbf16> to vector<64x128xbf16>
    %c256_76 = arith.constant 256 : index
    %c0_77 = arith.constant 0 : index
    %74 = vector.load %arg4[%c256_76, %c0_77] : memref<1152x128xbf16, #tpu.memory_space<vmem>>, vector<128x128xbf16>
    %cst_78 = arith.constant dense<0.000000e+00> : vector<64x128xf32>
    %75 = tpu.matmul %73, %74, %cst_78 {dimension_numbers = #tpu.dot_dimension_numbers<[1], [0], [0], [1], [0, 0, 1, 1], [], []>} : vector<64x128xbf16>, vector<128x128xbf16>, vector<64x128xf32> -> vector<64x128xf32>
    %76 = arith.addf %71, %75 : vector<64x128xf32>
    %c1_79 = arith.constant 1 : index
    %c0_80 = arith.constant 0 : index
    %c0_81 = arith.constant 0 : index
    %77 = vector.load %arg9[%c1_79, %c0_80, %c0_81] : memref<10x10x128xbf16, #tpu.memory_space<vmem>>, vector<8x8x128xbf16>
    %78 = vector.shape_cast %77 : vector<8x8x128xbf16> to vector<64x128xbf16>
    %c384_82 = arith.constant 384 : index
    %c0_83 = arith.constant 0 : index
    %79 = vector.load %arg4[%c384_82, %c0_83] : memref<1152x128xbf16, #tpu.memory_space<vmem>>, vector<128x128xbf16>
    %cst_84 = arith.constant dense<0.000000e+00> : vector<64x128xf32>
    %80 = tpu.matmul %78, %79, %cst_84 {dimension_numbers = #tpu.dot_dimension_numbers<[1], [0], [0], [1], [0, 0, 1, 1], [], []>} : vector<64x128xbf16>, vector<128x128xbf16>, vector<64x128xf32> -> vector<64x128xf32>
    %81 = arith.addf %76, %80 : vector<64x128xf32>
    %c1_85 = arith.constant 1 : index
    %c1_86 = arith.constant 1 : index
    %c0_87 = arith.constant 0 : index
    %82 = vector.load %arg9[%c1_85, %c1_86, %c0_87] : memref<10x10x128xbf16, #tpu.memory_space<vmem>>, vector<8x8x128xbf16>
    %83 = vector.shape_cast %82 : vector<8x8x128xbf16> to vector<64x128xbf16>
    %c512_88 = arith.constant 512 : index
    %c0_89 = arith.constant 0 : index
    %84 = vector.load %arg4[%c512_88, %c0_89] : memref<1152x128xbf16, #tpu.memory_space<vmem>>, vector<128x128xbf16>
    %cst_90 = arith.constant dense<0.000000e+00> : vector<64x128xf32>
    %85 = tpu.matmul %83, %84, %cst_90 {dimension_numbers = #tpu.dot_dimension_numbers<[1], [0], [0], [1], [0, 0, 1, 1], [], []>} : vector<64x128xbf16>, vector<128x128xbf16>, vector<64x128xf32> -> vector<64x128xf32>
    %86 = arith.addf %81, %85 : vector<64x128xf32>
    %c1_91 = arith.constant 1 : index
    %c2_92 = arith.constant 2 : index
    %c0_93 = arith.constant 0 : index
    %87 = vector.load %arg9[%c1_91, %c2_92, %c0_93] : memref<10x10x128xbf16, #tpu.memory_space<vmem>>, vector<8x8x128xbf16>
    %88 = vector.shape_cast %87 : vector<8x8x128xbf16> to vector<64x128xbf16>
    %c640_94 = arith.constant 640 : index
    %c0_95 = arith.constant 0 : index
    %89 = vector.load %arg4[%c640_94, %c0_95] : memref<1152x128xbf16, #tpu.memory_space<vmem>>, vector<128x128xbf16>
    %cst_96 = arith.constant dense<0.000000e+00> : vector<64x128xf32>
    %90 = tpu.matmul %88, %89, %cst_96 {dimension_numbers = #tpu.dot_dimension_numbers<[1], [0], [0], [1], [0, 0, 1, 1], [], []>} : vector<64x128xbf16>, vector<128x128xbf16>, vector<64x128xf32> -> vector<64x128xf32>
    %91 = arith.addf %86, %90 : vector<64x128xf32>
    %c2_97 = arith.constant 2 : index
    %c0_98 = arith.constant 0 : index
    %c0_99 = arith.constant 0 : index
    %92 = vector.load %arg9[%c2_97, %c0_98, %c0_99] : memref<10x10x128xbf16, #tpu.memory_space<vmem>>, vector<8x8x128xbf16>
    %93 = vector.shape_cast %92 : vector<8x8x128xbf16> to vector<64x128xbf16>
    %c768_100 = arith.constant 768 : index
    %c0_101 = arith.constant 0 : index
    %94 = vector.load %arg4[%c768_100, %c0_101] : memref<1152x128xbf16, #tpu.memory_space<vmem>>, vector<128x128xbf16>
    %cst_102 = arith.constant dense<0.000000e+00> : vector<64x128xf32>
    %95 = tpu.matmul %93, %94, %cst_102 {dimension_numbers = #tpu.dot_dimension_numbers<[1], [0], [0], [1], [0, 0, 1, 1], [], []>} : vector<64x128xbf16>, vector<128x128xbf16>, vector<64x128xf32> -> vector<64x128xf32>
    %96 = arith.addf %91, %95 : vector<64x128xf32>
    %c2_103 = arith.constant 2 : index
    %c1_104 = arith.constant 1 : index
    %c0_105 = arith.constant 0 : index
    %97 = vector.load %arg9[%c2_103, %c1_104, %c0_105] : memref<10x10x128xbf16, #tpu.memory_space<vmem>>, vector<8x8x128xbf16>
    %98 = vector.shape_cast %97 : vector<8x8x128xbf16> to vector<64x128xbf16>
    %c896_106 = arith.constant 896 : index
    %c0_107 = arith.constant 0 : index
    %99 = vector.load %arg4[%c896_106, %c0_107] : memref<1152x128xbf16, #tpu.memory_space<vmem>>, vector<128x128xbf16>
    %cst_108 = arith.constant dense<0.000000e+00> : vector<64x128xf32>
    %100 = tpu.matmul %98, %99, %cst_108 {dimension_numbers = #tpu.dot_dimension_numbers<[1], [0], [0], [1], [0, 0, 1, 1], [], []>} : vector<64x128xbf16>, vector<128x128xbf16>, vector<64x128xf32> -> vector<64x128xf32>
    %101 = arith.addf %96, %100 : vector<64x128xf32>
    %c2_109 = arith.constant 2 : index
    %c2_110 = arith.constant 2 : index
    %c0_111 = arith.constant 0 : index
    %102 = vector.load %arg9[%c2_109, %c2_110, %c0_111] : memref<10x10x128xbf16, #tpu.memory_space<vmem>>, vector<8x8x128xbf16>
    %103 = vector.shape_cast %102 : vector<8x8x128xbf16> to vector<64x128xbf16>
    %c1024_112 = arith.constant 1024 : index
    %c0_113 = arith.constant 0 : index
    %104 = vector.load %arg4[%c1024_112, %c0_113] : memref<1152x128xbf16, #tpu.memory_space<vmem>>, vector<128x128xbf16>
    %cst_114 = arith.constant dense<0.000000e+00> : vector<64x128xf32>
    %105 = tpu.matmul %103, %104, %cst_114 {dimension_numbers = #tpu.dot_dimension_numbers<[1], [0], [0], [1], [0, 0, 1, 1], [], []>} : vector<64x128xbf16>, vector<128x128xbf16>, vector<64x128xf32> -> vector<64x128xf32>
    %106 = arith.addf %101, %105 : vector<64x128xf32>
    %c0_115 = arith.constant 0 : index
    %c0_116 = arith.constant 0 : index
    %107 = vector.load %arg5[%c0_115, %c0_116] : memref<1x128xf32, #tpu.memory_space<vmem>>, vector<1x128xf32>
    %108 = vector.broadcast %107 : vector<1x128xf32> to vector<64x128xf32>
    %109 = arith.addf %106, %108 : vector<64x128xf32>
    %c0_117 = arith.constant 0 : index
    %c0_118 = arith.constant 0 : index
    %c0_119 = arith.constant 0 : index
    %c384_120 = arith.constant 384 : index
    %110 = vector.load %arg1[%c0_117, %c0_118, %c0_119, %c384_120] : memref<1x9x9x512xbf16, #tpu.memory_space<vmem>>, vector<1x8x8x128xbf16>
    %111 = vector.shape_cast %110 : vector<1x8x8x128xbf16> to vector<8x8x128xbf16>
    %112 = vector.shape_cast %111 : vector<8x8x128xbf16> to vector<64x128xbf16>
    %c0_121 = arith.constant 0 : index
    %c0_122 = arith.constant 0 : index
    %113 = vector.load %arg6[%c0_121, %c0_122] : memref<128x128xbf16, #tpu.memory_space<vmem>>, vector<128x128xbf16>
    %cst_123 = arith.constant dense<0.000000e+00> : vector<64x128xf32>
    %114 = tpu.matmul %112, %113, %cst_123 {dimension_numbers = #tpu.dot_dimension_numbers<[1], [0], [0], [1], [0, 0, 1, 1], [], []>} : vector<64x128xbf16>, vector<128x128xbf16>, vector<64x128xf32> -> vector<64x128xf32>
    %115 = arith.addf %109, %114 : vector<64x128xf32>
    %c0_124 = arith.constant 0 : index
    %c0_125 = arith.constant 0 : index
    %116 = vector.load %arg7[%c0_124, %c0_125] : memref<1x128xf32, #tpu.memory_space<vmem>>, vector<1x128xf32>
    %117 = vector.broadcast %116 : vector<1x128xf32> to vector<64x128xf32>
    %118 = arith.addf %115, %117 : vector<64x128xf32>
    %cst_126 = arith.constant 0.000000e+00 : f32
    %119 = vector.broadcast %cst_126 : f32 to vector<64x128xf32>
    %120 = arith.maximumf %118, %119 : vector<64x128xf32>
    %121 = vector.shape_cast %120 : vector<64x128xf32> to vector<8x8x128xf32>
    %122 = arith.truncf %121 : vector<8x8x128xf32> to vector<8x8x128xbf16>
    %c0_127 = arith.constant 0 : index
    %c0_128 = arith.constant 0 : index
    %c0_129 = arith.constant 0 : index
    %c0_130 = arith.constant 0 : index
    %123 = vector.load %arg8[%c0_127, %c0_128, %c0_129, %c0_130] : memref<1x8x8x128xbf16, #tpu.memory_space<vmem>>, vector<1x8x8x128xbf16>
    %124 = vector.shape_cast %123 : vector<1x8x8x128xbf16> to vector<8x8x128xbf16>
    %125 = vector.shape_cast %122 : vector<8x8x128xbf16> to vector<1x8x8x128xbf16>
    tpu.vector_store %arg8[%c0_127, %c0_128, %c0_129, %c0_130], %125 {strides = array<i32>} : memref<1x8x8x128xbf16, #tpu.memory_space<vmem>>, vector<1x8x8x128xbf16>,
    return
  }
  func.func @transform_0(%arg0: i32) -> (i32, i32, i32, i32) {
    %c0_i32 = arith.constant 0 : i32
    %c0_i32_0 = arith.constant 0 : i32
    %c0_i32_1 = arith.constant 0 : i32
    %c0_i32_2 = arith.constant 0 : i32
    return %arg0, %c0_i32, %c0_i32_0, %c0_i32_1 : i32, i32, i32, i32
  }
  func.func @transform_1(%arg0: i32) -> (i32, i32) {
    %c0_i32 = arith.constant 0 : i32
    %c0_i32_0 = arith.constant 0 : i32
    %c0_i32_1 = arith.constant 0 : i32
    return %c0_i32, %c0_i32_0 : i32, i32
  }
  func.func @transform_2(%arg0: i32) -> (i32, i32) {
    %c0_i32 = arith.constant 0 : i32
    %c0_i32_0 = arith.constant 0 : i32
    %c0_i32_1 = arith.constant 0 : i32
    return %c0_i32, %c0_i32_0 : i32, i32
  }
  func.func @transform_3(%arg0: i32) -> (i32, i32) {
    %c0_i32 = arith.constant 0 : i32
    %c0_i32_0 = arith.constant 0 : i32
    %c0_i32_1 = arith.constant 0 : i32
    return %c0_i32, %c0_i32_0 : i32, i32
  }
  func.func @transform_4(%arg0: i32) -> (i32, i32) {
    %c0_i32 = arith.constant 0 : i32
    %c0_i32_0 = arith.constant 0 : i32
    %c0_i32_1 = arith.constant 0 : i32
    return %c0_i32, %c0_i32_0 : i32, i32
  }
  func.func @transform_5(%arg0: i32) -> (i32, i32) {
    %c0_i32 = arith.constant 0 : i32
    %c0_i32_0 = arith.constant 0 : i32
    %c0_i32_1 = arith.constant 0 : i32
    return %c0_i32, %c0_i32_0 : i32, i32
  }
  func.func @transform_6(%arg0: i32) -> (i32, i32) {
    %c0_i32 = arith.constant 0 : i32
    %c0_i32_0 = arith.constant 0 : i32
    %c0_i32_1 = arith.constant 0 : i32
    return %c0_i32, %c0_i32_0 : i32, i32
  }
  func.func @transform_7(%arg0: i32) -> (i32, i32, i32, i32) {
    %c0_i32 = arith.constant 0 : i32
    %c0_i32_0 = arith.constant 0 : i32
    %c0_i32_1 = arith.constant 0 : i32
    %c0_i32_2 = arith.constant 0 : i32
    return %arg0, %c0_i32, %c0_i32_0, %c0_i32_1 : i32, i32, i32, i32
  }
}

</mosaic_0001>

<bundles_post_ra>
// kernel: basic_block_forward.1
= control target key start
LH: loop header
LB: loop body
LE: loop exit
PB: predicated region body
PF: predicated region fallthrough
CT: control target
= control target key end

     0   :  { %s5974_s24 = smov 0   ;;  %s6983_s0 = inlined_call_operand.vmem [shape: bf16[2,9,9,512], index: 0, kind: input, shape index: {}]   ;;  %s6984_s1 = inlined_call_operand.vmem [shape: bf16[1152,128], index: 1, kind: input, shape index: {}]   ;;  %s6985_s2 = inlined_call_operand.vmem [shape: f32[1,128], index: 2, kind: input, shape index: {}]   ;;  %s6986_s3 = inlined_call_operand.vmem [shape: bf16[1152,128], index: 3, kind: input, shape index: {}]   ;;  %s6987_s4 = inlined_call_operand.vmem [shape: f32[1,128], index: 4, kind: input, shape index: {}]   ;;  %s6988_s5 = inlined_call_operand.vmem [shape: bf16[128,128], index: 5, kind: input, shape index: {}]   ;;  %s6989_s6 = inlined_call_operand.vmem [shape: f32[1,128], index: 6, kind: input, shape index: {}]   ;;  %s6990_s7 = inlined_call_operand.vmem [shape: bf16[2,8,8,128], index: 7, kind: output, shape index: {}]  }
   0x1 LB: > { %s4570_s25 = sadd.s32 4294967295, %s5931_s24   ;;  %p4574_p0 = scmp.ge.s32.totalorder %s5931_s24, 1  ;;  %s5931_s24 = sphi %s5974_s24, %s17_s24  }
   0x2   : > { %p237_p1 = scmp.lt.s32.totalorder %s5931_s24, 3 }
   0x4   : > { %p238_p2 = pnand %p4574_p0, %p237_p1 }
   0x5   : > { %v5761_v0 = vld [vmem:[%s6984_s1 + $0x40] sm:$0xff] (!%p238_p2)   ;;  %p269_p3 = scmp.lt.s32.totalorder (!%p238_p2), %s4570_s25, 1  ;;  %v5762_v1 = vld [vmem:[%s6984_s1 + $0x48] sm:$0xff] (!%p238_p2)   ;;  %v5763_v2 = vld [vmem:[%s6984_s1 + $0x50] sm:$0xff] (!%p238_p2)   ;;  %vm618_vm0 = vsmask.f32 (!%p238_p2), 3328 }
   0x6   : > { %241 = sbr.rel (%p238_p2) target bundleno = 1059 (0x423), region = 48  ;;  %5135 = vmatprep.subr.bf16.mxu0 (!%p238_p2), %v5761_v0  ;;  %v5764_v3 = vld [vmem:[%s6984_s1 + $0x58] sm:$0xff] (!%p238_p2)   ;;  %v5765_v7 = vld [vmem:[%s6984_s1 + $0x60] sm:$0xff] (!%p238_p2)   ;;  %v5766_v8 = vld [vmem:[%s6984_s1 + $0x68] sm:$0xff] (!%p238_p2)   ;;  %vm619_vm1 = vsmask.f32 (!%p238_p2), 7440 }
   0x7   : > { %5136 = vmatpush3.bf16.msra.mxu0 (!%p238_p2), %v5761_v0  ;;  %v5767_v9 = vld [vmem:[%s6984_s1 + $0x70] sm:$0xff] (!%p238_p2)   ;;  %v5768_v10 = vld [vmem:[%s6984_s1 + $0x78] sm:$0xff] (!%p238_p2)   ;;  %v5769_v11 = vld [vmem:[%s6984_s1] sm:$0xff] (!%p238_p2)   ;;  %vm2281_vm3 = vcmask (!%p238_p2), 1043456   ;;  %vm2282_vm4 = vsmask.f32 (!%p238_p2), 7938 }
   0x8   : > { %5137 = vmatprep.subr.bf16.mxu0 (!%p238_p2), %v5762_v1  ;;  %v5770_v18 = vld [vmem:[%s6984_s1 + $0x8] sm:$0xff] (!%p238_p2)   ;;  %v5771_v19 = vld [vmem:[%s6984_s1 + $0x10] sm:$0xff] (!%p238_p2)   ;;  %v5772_v25 = vld [vmem:[%s6984_s1 + $0x18] sm:$0xff] (!%p238_p2)   ;;  %vm2287_vm5 = vcmask (!%p238_p2), 1040384   ;;  %vm2288_vm6 = vsmask.f32 (!%p238_p2), 256 }
   0x9   : > { %v5773_v27 = vld [vmem:[%s6984_s1 + $0x20] sm:$0xff] (!%p238_p2)   ;;  %v5774_v29 = vld [vmem:[%s6984_s1 + $0x28] sm:$0xff] (!%p238_p2)   ;;  %v5775_v35 = vld [vmem:[%s6984_s1 + $0x30] sm:$0xff] (!%p238_p2)   ;;  %vm2785_vm9 = vcmask (!%p238_p2), 1042432   ;;  %vm2786_vm10 = vcmask (!%p238_p2), 1046532  }
   0xa   : > { %v5776_v36 = vld [vmem:[%s6984_s1 + $0x38] sm:$0xff] (!%p238_p2)   ;;  %v5777_v43 = vld [vmem:[%s6984_s1 + $0x80] sm:$0xff] (!%p238_p2)   ;;  %v5778_v53 = vld [vmem:[%s6984_s1 + $0x88] sm:$0xff] (!%p238_p2)  }
   0xb   : > { %5138 = vmatpush3.bf16.msra.mxu0 (!%p238_p2), %v5762_v1  ;;  %vm6062_vm2 = vmor (!%p238_p2), %vm618_vm0, %vm619_vm1  ;;  %v5779_v62 = vld [vmem:[%s6984_s1 + $0x90] sm:$0xff] (!%p238_p2)   ;;  %v5917_v59 = vld [vmem:[%s6986_s3 + $0x220] sm:$0xff] (!%p238_p2)  }
   0xc   : > { %5139 = vmatprep.subr.bf16.mxu0 (!%p238_p2), %v5763_v2  ;;  %vm6406_vm7 = vmand (!%p238_p2), %vm2281_vm3, %vm2282_vm4 }
   0xd   : > { %s7000_s25 = smov (!%p269_p3, %s4570_s25), 1  ;;  %vm6413_vm8 = vmand %vm2287_vm5, %vm2288_vm6 }
   0xe   : > { %s5751_s9 = smul.u32 288, %s7000_s25  ;;  %vm6525_vm11 = vmor %vm2785_vm9, %vm2786_vm10  ;;  %s4875_s16 = sshll.u32 %s7000_s25, 5 }
   0xf   : > { %5140 = vmatpush3.bf16.msra.mxu0 %v5763_v2  ;;  %s278_s19 = scalar_lea.vmem %s6990_s7, %s4875_s16 }
  0x10   : > { %s5997_s12 = scalar_lea.vmem %s6983_s0, %s5751_s9  ;;  %5141 = vmatprep.subr.bf16.mxu0 %v5764_v3 }
  0x11   : > { %v304_v4 = vld [vmem:[%s5997_s12 + $0x4] sm:$0xf]  ;;  %v280_v22 = vld [vmem:[%s5997_s12] sm:$0xf]  ;;  %v603_v37 = vld [vmem:[%s5997_s12 + $0x10] sm:$0x1] }
  0x12   : > { %v305_v5 = vld [vmem:[%s5997_s12 + $0x24] sm:$0xf]  ;;  %v281_v23 = vld [vmem:[%s5997_s12 + $0x20] sm:$0xf]  ;;  %v605_v38 = vld [vmem:[%s5997_s12 + $0x30] sm:$0x1] }
  0x13   : > { %v4578_v6 = vcombine.low %v304_v4, %v305_v5  ;;  %5142 = vmatpush3.bf16.msra.mxu0 %v5764_v3  ;;  %v306_v12 = vld [vmem:[%s5997_s12 + $0x44] sm:$0xf]  ;;  %v4590_v26 = vcombine.low %v280_v22, %v281_v23  ;;  %v602_v28 = vld [vmem:[%s5997_s12] sm:$0xf]  ;;  %v631_v47 = vshll.u32 %v603_v37, 16  ;;  %v645_v48 = vshll.u32 %v605_v38, 16 }
  0x14   : > { %5143 = vmatprep.subr.bf16.mxu0 %v5765_v7  ;;  %v307_v13 = vld [vmem:[%s5997_s12 + $0x64] sm:$0xf]  ;;  %v604_v30 = vld [vmem:[%s5997_s12 + $0x20] sm:$0xf]  ;;  %v622_v31 = vshrl.u32 %v602_v28, 16  ;;  %v625_v32 = vshll.u32 %v602_v28, 16 }
  0x15   : > { %5151 = vmatprep.mubr.bf16.mxu0 %v4578_v6  ;;  %v308_v14 = vld [vmem:[%s5997_s12 + $0x84] sm:$0xf]  ;;  %v4579_v16 = vcombine.low %v306_v12, %v307_v13  ;;  %v636_v33 = vshrl.u32 %v604_v30, 16  ;;  %v639_v34 = vshll.u32 %v604_v30, 16  ;;  %v282_v44 = vld [vmem:[%s5997_s12 + $0x40] sm:$0xf] }
  0x16   : > { %v309_v15 = vld [vmem:[%s5997_s12 + $0xa4] sm:$0xf]  ;;  %v624_v39 = vrot.slane %v622_v31, 4  ;;  %v627_v40 = vrot.slane %v625_v32, 5  ;;  %v283_v45 = vld [vmem:[%s5997_s12 + $0x60] sm:$0xf] }
  0x17   : > { %5144 = vmatpush3.bf16.msra.mxu0 %v5765_v7  ;;  %v4580_v17 = vcombine.low %v308_v14, %v309_v15  ;;  %v310_v20 = vld [vmem:[%s5997_s12 + $0xc4] sm:$0xf]  ;;  %v638_v41 = vrot.slane %v636_v33, 4  ;;  %v641_v42 = vrot.slane %v639_v34, 5  ;;  %v284_v46 = vld [vmem:[%s5997_s12 + $0x80] sm:$0xf]  ;;  %v4591_v52 = vcombine.low %v282_v44, %v283_v45 }
  0x18   : > { %5145 = vmatprep.subr.bf16.mxu0 %v5766_v8  ;;  %v311_v21 = vld [vmem:[%s5997_s12 + $0xe4] sm:$0xf]  ;;  %v285_v49 = vld [vmem:[%s5997_s12 + $0xa0] sm:$0xf]  ;;  %v628_v50 = vor.u32 %v627_v40, %v624_v39  ;;  %v633_v55 = vrot.slane %v631_v47, 5  ;;  %v647_v56 = vrot.slane %v645_v48, 5 }
  0x19   : > { %v4581_v24 = vcombine.low %v310_v20, %v311_v21  ;;  %v642_v51 = vor.u32 %v641_v42, %v638_v41  ;;  %v4592_v54 = vcombine.low %v284_v46, %v285_v49  ;;  %v286_v60 = vld [vmem:[%s5997_s12 + $0xc0] sm:$0xf]  ;;  %v5780_v5 = vld [vmem:[%s6984_s1 + $0x98] sm:$0xff]   ;;  %v607_v6 = vld [vmem:[%s5997_s12 + $0x50] sm:$0x1] }
  0x1a   : > { %v629_v57 = vrot.slane %v628_v50, 4  ;;  %v287_v61 = vld [vmem:[%s5997_s12 + $0xe0] sm:$0xf]  ;;  %v5782_v21 = vld [vmem:[%s6984_s1 + $0xa8] sm:$0xff]   ;;  %v5783_v40 = vld [vmem:[%s6984_s1 + $0xb0] sm:$0xff]  }
  0x1b   : > { %5146 = vmatpush3.bf16.msra.mxu0 %v5766_v8  ;;  %v643_v58 = vrot.slane %v642_v51, 4  ;;  %v4593_v1 = vcombine.low %v286_v60, %v287_v61  ;;  %v606_v3 = vld [vmem:[%s5997_s12 + $0x40] sm:$0xf]  ;;  %v609_v8 = vld [vmem:[%s5997_s12 + $0x70] sm:$0x1]  ;;  %v5784_v47 = vld [vmem:[%s6984_s1 + $0xb8] sm:$0xff]  }
  0x1c   : > { %5147 = vmatprep.subr.bf16.mxu0 %v5767_v9  ;;  %v634_v63 = vsel %vm6062_vm2, %v629_v57, %v633_v55  ;;  %v608_v4 = vld [vmem:[%s5997_s12 + $0x60] sm:$0xf]  ;;  %v673_v20 = vshll.u32 %v609_v8, 16  ;;  %v615_v50 = vld [vmem:[%s5997_s12 + $0xd0] sm:$0x1] }
  0x1d   : > { %v648_v0 = vsel %vm6062_vm2, %v643_v58, %v647_v56  ;;  %v610_v7 = vld [vmem:[%s5997_s12 + $0x80] sm:$0xf]  ;;  %v664_v12 = vshrl.u32 %v608_v4, 16  ;;  %v667_v13 = vshll.u32 %v608_v4, 16  ;;  %v617_v60 = vld [vmem:[%s5997_s12 + $0xf0] sm:$0x1] }
  0x1e   : > { %v4602_v2 = vcombine.low %v634_v63, %v648_v0  ;;  %v678_v14 = vshrl.u32 %v610_v7, 16  ;;  %v681_v15 = vshll.u32 %v610_v7, 16  ;;  %v614_v30 = vld [vmem:[%s5997_s12 + $0xc0] sm:$0xf]  ;;  %v675_v46 = vrot.slane %v673_v20, 5 }
  0x1f   : > { %5148 = vmatpush3.bf16.msra.mxu0 %v5767_v9  ;;  %v612_v9 = vld [vmem:[%s5997_s12 + $0xa0] sm:$0xf]  ;;  %v709_v37 = vshll.u32 %v614_v30, 16  ;;  %v715_v61 = vshll.u32 %v615_v50, 16  ;;  %v1225_v50 = vld [vmem:[%s5997_s12 + $0x18] sm:$0x1] }
  0x20   : > { %5149 = vmatprep.subr.bf16.mxu0 %v5768_v10  ;;  %v680_v28 = vrot.slane %v678_v14, 4  ;;  %v616_v33 = vld [vmem:[%s5997_s12 + $0xe0] sm:$0xf]  ;;  %v886_v14 = vld [vmem:[%s5997_s12 + $0x8] sm:$0xf] }
  0x21   : > { %v720_v38 = vshrl.u32 %v616_v33, 16  ;;  %v723_v39 = vshll.u32 %v616_v33, 16  ;;  %v892_v33 = vld [vmem:[%s5997_s12 + $0xc8] sm:$0xf] }
  0x23   : > { %5150 = vmatpush3.bf16.msra.mxu0 %v5768_v10  ;;  %v650_v10 = vshrl.u32 %v606_v3, 16 }
  0x24   : > { %5159 = vmatprep.subr.bf16.mxu0 %v5769_v11 }
  0x25   : > { %v652_v22 = vrot.slane %v650_v10, 4 }
  0x26   : > { %5152 = vmatmul.mubr.bf16.vlgmr.msra.gmra.mrb[0].mxu0 %v4579_v16  ;;  %v5781_v16 = vld [vmem:[%s6984_s1 + $0xa0] sm:$0xff]  }
  0x27   : > { %5160 = vmatpush3.bf16.msra.mxu0 %v5769_v11  ;;  %5155 = vmatprep.mubr.bf16.mxu0 %v4580_v17  ;;  %v653_v11 = vshll.u32 %v606_v3, 16  ;;  %v692_v17 = vshrl.u32 %v612_v9, 16  ;;  %v5785_v3 = vld [vmem:[%s6984_s1 + $0xc0] sm:$0xff]  }
  0x28   : > { %5161 = vmatprep.subr.bf16.mxu0 %v5770_v18 }
  0x29   : > { %v655_v23 = vrot.slane %v653_v11, 5  ;;  %v694_v31 = vrot.slane %v692_v17, 4  ;;  %v887_v17 = vld [vmem:[%s5997_s12 + $0x28] sm:$0xf] }
  0x2a   : > { %v4614_v20 = vcombine.low %v886_v14, %v887_v17 }
  0x2b   : > { %5162 = vmatpush3.bf16.msra.mxu0 %v5770_v18  ;;  %v695_v18 = vshll.u32 %v612_v9, 16  ;;  %v656_v34 = vor.u32 %v655_v23, %v652_v22  ;;  %v5790_v22 = vld [vmem:[%s6984_s1 + $0xe8] sm:$0xff]   ;;  %v5791_v23 = vld [vmem:[%s6984_s1 + $0xf0] sm:$0xff]  }
  0x2c   : > { %5163 = vmatprep.subr.bf16.mxu0 %v5771_v19 }
  0x2d   : > { %v697_v32 = vrot.slane %v695_v18, 5  ;;  %v657_v48 = vrot.slane %v656_v34, 4  ;;  %v893_v34 = vld [vmem:[%s5997_s12 + $0xe8] sm:$0xf] }
  0x2e   : > { %5156 = vmatmul.mubr.bf16.gmra.mrb[4].mxu0 %v4581_v24  ;;  %v666_v24 = vrot.slane %v664_v12, 4  ;;  %v5786_v12 = vld [vmem:[%s6984_s1 + $0xc8] sm:$0xff]  }
  0x2f   : > { %5164 = vmatpush3.bf16.msra.mxu0 %v5771_v19  ;;  %5175 = vmatprep.mubr.bf16.mxu0 %v4590_v26  ;;  %v659_v19 = vshll.u32 %v607_v6, 16  ;;  %v611_v26 = vld [vmem:[%s5997_s12 + $0x90] sm:$0x1]  ;;  %v717_v6 = vrot.slane %v715_v61, 5  ;;  %v1230_v61 = vld [vmem:[%s5997_s12 + $0x68] sm:$0xf] }
  0x30   : > { %5165 = vmatprep.subr.bf16.mxu0 %v5772_v25  ;;  %v687_v42 = vshll.u32 %v611_v26, 16  ;;  %v889_v26 = vld [vmem:[%s5997_s12 + $0x68] sm:$0xf] }
  0x31   : > { %v661_v45 = vrot.slane %v659_v19, 5  ;;  %v5788_v19 = vld [vmem:[%s6984_s1 + $0xd8] sm:$0xff]  }
  0x32   : > { %v689_v56 = vrot.slane %v687_v42, 5  ;;  %v5797_v42 = vld [vmem:[%s6984_s1 + $0x120] sm:$0xff]  }
  0x33   : > { %5166 = vmatpush3.bf16.msra.mxu0 %v5772_v25  ;;  %v669_v25 = vrot.slane %v667_v13, 5  ;;  %v5787_v13 = vld [vmem:[%s6984_s1 + $0xd0] sm:$0xff]  }
  0x34   : > { %5167 = vmatprep.subr.bf16.mxu0 %v5773_v27 }
  0x37   : > { %5168 = vmatpush3.bf16.msra.mxu0 %v5773_v27  ;;  %v613_v27 = vld [vmem:[%s5997_s12 + $0xb0] sm:$0x1] }
  0x38   : > { %5169 = vmatprep.subr.bf16.mxu0 %v5774_v29  ;;  %v701_v44 = vshll.u32 %v613_v27, 16  ;;  %v5793_v27 = vld [vmem:[%s6984_s1 + $0x100] sm:$0xff]  }
  0x3a   : > { %v703_v58 = vrot.slane %v701_v44, 5 }
  0x3b   : > { %5170 = vmatpush3.bf16.msra.mxu0 %v5774_v29  ;;  %v683_v29 = vrot.slane %v681_v15, 5 }
  0x3c   : > { %5171 = vmatprep.subr.bf16.mxu0 %v5775_v35 }
  0x3d   : > { %v684_v41 = vor.u32 %v683_v29, %v680_v28  ;;  %v890_v28 = vld [vmem:[%s5997_s12 + $0x88] sm:$0xf] }
  0x3e   : > { %v891_v29 = vld [vmem:[%s5997_s12 + $0xa8] sm:$0xf] }
  0x3f   : > { %5172 = vmatpush3.bf16.msra.mxu0 %v5775_v35  ;;  %v670_v35 = vor.u32 %v669_v25, %v666_v24  ;;  %v685_v55 = vrot.slane %v684_v41, 4  ;;  %v5792_v24 = vld [vmem:[%s6984_s1 + $0xf8] sm:$0xff]   ;;  %v888_v25 = vld [vmem:[%s5997_s12 + $0x48] sm:$0xf] }
  0x40   : > { %5173 = vmatprep.subr.bf16.mxu0 %v5776_v36  ;;  %v1224_v41 = vld [vmem:[%s5997_s12 + $0x8] sm:$0xf] }
  0x41   : > { %v671_v49 = vrot.slane %v670_v35, 4  ;;  %v690_v4 = vsel %vm6062_vm2, %v685_v55, %v689_v56  ;;  %v5795_v35 = vld [vmem:[%s6984_s1 + $0x110] sm:$0xff]   ;;  %v1241_v44 = vshrl.u32 %v1224_v41, 16  ;;  %v1228_v56 = vld [vmem:[%s5997_s12 + $0x48] sm:$0xf] }
  0x43   : > { %5174 = vmatpush3.bf16.msra.mxu0 %v5776_v36  ;;  %v706_v36 = vshrl.u32 %v614_v30, 16  ;;  %v676_v63 = vsel %vm6062_vm2, %v671_v49, %v675_v46  ;;  %v4615_v30 = vcombine.low %v888_v25, %v889_v26  ;;  %v5798_v46 = vld [vmem:[%s6984_s1 + $0x128] sm:$0xff]   ;;  %v5799_v49 = vld [vmem:[%s6984_s1 + $0x130] sm:$0xff]  }
  0x44   : > { %5183 = vmatprep.subr.bf16.mxu0 %v5777_v43 }
  0x45   : > { %v708_v51 = vrot.slane %v706_v36, 4  ;;  %v1055_v36 = vld [vmem:[%s5997_s12 + $0xc] sm:$0xf] }
  0x46   : > { %5176 = vmatmul.mubr.bf16.vlgmr.msra.gmra.mrb[0].mxu0 %v4591_v52  ;;  %v711_v52 = vrot.slane %v709_v37, 5  ;;  %v1056_v37 = vld [vmem:[%s5997_s12 + $0x2c] sm:$0xf] }
  0x47   : > { %5184 = vmatpush3.bf16.msra.mxu0 %v5777_v43  ;;  %5179 = vmatprep.mubr.bf16.mxu0 %v4592_v54  ;;  %v698_v43 = vor.u32 %v697_v32, %v694_v31  ;;  %v725_v54 = vrot.slane %v723_v39, 5  ;;  %v4616_v31 = vcombine.low %v890_v28, %v891_v29  ;;  %v5794_v32 = vld [vmem:[%s6984_s1 + $0x108] sm:$0xff]   ;;  %v4617_v39 = vcombine.low %v892_v33, %v893_v34 }
  0x48   : > { %5185 = vmatprep.subr.bf16.mxu0 %v5778_v53  ;;  %v712_v0 = vor.u32 %v711_v52, %v708_v51  ;;  %v1227_v51 = vld [vmem:[%s5997_s12 + $0x38] sm:$0x1]  ;;  %v1243_v52 = vrot.slane %v1241_v44, 4 }
  0x49   : > { %v699_v57 = vrot.slane %v698_v43, 4  ;;  %v1226_v43 = vld [vmem:[%s5997_s12 + $0x28] sm:$0xf] }
  0x4a   : > { %v713_v9 = vrot.slane %v712_v0, 4  ;;  %v1059_v0 = vld [vmem:[%s5997_s12 + $0x8c] sm:$0xf] }
  0x4b   : > { %5186 = vmatpush3.bf16.msra.mxu0 %v5778_v53  ;;  %v722_v53 = vrot.slane %v720_v38, 4  ;;  %v5796_v38 = vld [vmem:[%s6984_s1 + $0x118] sm:$0xff]  }
  0x4c   : > { %5187 = vmatprep.subr.bf16.mxu0 %v5779_v62  ;;  %v718_v15 = vsel %vm6062_vm2, %v713_v9, %v717_v6  ;;  %v1232_v6 = vld [vmem:[%s5997_s12 + $0x88] sm:$0xf]  ;;  %v1286_v9 = vshll.u32 %v1230_v61, 16 }
  0x4d   : > { %v1297_v17 = vshrl.u32 %v1232_v6, 16 }
  0x4e   : > { %5180 = vmatmul.mubr.bf16.gmra.mrb[4].mxu0 %v4593_v1  ;;  %v726_v1 = vor.u32 %v725_v54, %v722_v53 }
  0x4f   : > { %5188 = vmatpush3.bf16.msra.mxu0 %v5779_v62  ;;  %5199 = vmatprep.mubr.bf16.mxu0 %v4602_v2  ;;  %v662_v62 = vsel %vm6062_vm2, %v657_v48, %v661_v45  ;;  %v729_v2 = vshll.u32 %v617_v60, 16  ;;  %v1244_v45 = vshll.u32 %v1224_v41, 16  ;;  %v1258_v48 = vshll.u32 %v1226_v43, 16 }
  0x50   : > { %5189 = vmatprep.subr.bf16.mxu0 %v5780_v5  ;;  %v4603_v7 = vcombine.low %v662_v62, %v676_v63  ;;  %v727_v10 = vrot.slane %v726_v1, 4  ;;  %v1264_v60 = vshll.u32 %v1227_v51, 16  ;;  %v1057_v62 = vld [vmem:[%s5997_s12 + $0x4c] sm:$0xf] }
  0x51   : > { %v731_v11 = vrot.slane %v729_v2, 5  ;;  %v1246_v53 = vrot.slane %v1244_v45, 5  ;;  %v1260_v55 = vrot.slane %v1258_v48, 5  ;;  %v1058_v63 = vld [vmem:[%s5997_s12 + $0x6c] sm:$0xf] }
  0x52   : > { %v1060_v1 = vld [vmem:[%s5997_s12 + $0xac] sm:$0xf] }
  0x53   : > { %5190 = vmatpush3.bf16.msra.mxu0 %v5780_v5  ;;  %v704_v5 = vsel %vm6062_vm2, %v699_v57, %v703_v58  ;;  %v5800_v57 = vld [vmem:[%s6984_s1 + $0x138] sm:$0xff]   ;;  %v1250_v58 = vshll.u32 %v1225_v50, 16  ;;  %v1247_v2 = vor.u32 %v1246_v53, %v1243_v52  ;;  %v4628_v14 = vcombine.low %v1059_v0, %v1060_v1  ;;  %v1238_v52 = vld [vmem:[%s5997_s12 + $0xe8] sm:$0xf]  ;;  %v5805_v1 = vld [vmem:[%s6984_s1 + $0x160] sm:$0xff]  }
  0x54   : > { %5191 = vmatprep.subr.bf16.mxu0 %v5781_v16  ;;  %v4604_v8 = vcombine.low %v690_v4, %v704_v5  ;;  %v1269_v4 = vshrl.u32 %v1228_v56, 16  ;;  %v1272_v5 = vshll.u32 %v1228_v56, 16  ;;  %v5804_v53 = vld [vmem:[%s6984_s1 + $0x158] sm:$0xff]   ;;  %v1342_v0 = vshll.u32 %v1238_v52, 16 }
  0x57   : > { %5192 = vmatpush3.bf16.msra.mxu0 %v5781_v16  ;;  %v732_v16 = vsel %vm6062_vm2, %v727_v10, %v731_v11  ;;  %v1252_v10 = vrot.slane %v1250_v58, 5  ;;  %v1266_v11 = vrot.slane %v1264_v60, 5 }
  0x58   : > { %5193 = vmatprep.subr.bf16.mxu0 %v5782_v21  ;;  %v4605_v18 = vcombine.low %v718_v15, %v732_v16  ;;  %v1229_v15 = vld [vmem:[%s5997_s12 + $0x58] sm:$0x1] }
  0x59   : > { %v1231_v16 = vld [vmem:[%s5997_s12 + $0x78] sm:$0x1]  ;;  %v1278_v28 = vshll.u32 %v1229_v15, 16 }
  0x5a   : > { %v1292_v29 = vshll.u32 %v1231_v16, 16 }
  0x5b   : > { %5194 = vmatpush3.bf16.msra.mxu0 %v5782_v21  ;;  %v5789_v21 = vld [vmem:[%s6984_s1 + $0xe0] sm:$0xff]   ;;  %v1280_v44 = vrot.slane %v1278_v28, 5 }
  0x5c   : > { %5195 = vmatprep.subr.bf16.mxu0 %v5783_v40 }
  0x5f   : > { %5196 = vmatpush3.bf16.msra.mxu0 %v5783_v40  ;;  %v4626_v40 = vcombine.low %v1055_v36, %v1056_v37  ;;  %v1236_v36 = vld [vmem:[%s5997_s12 + $0xc8] sm:$0xf]  ;;  %v1061_v37 = vld [vmem:[%s5997_s12 + $0xcc] sm:$0xf] }
  0x60   : > { %5197 = vmatprep.subr.bf16.mxu0 %v5784_v47 }
  0x63   : > { %5198 = vmatpush3.bf16.msra.mxu0 %v5784_v47  ;;  %v1255_v47 = vshrl.u32 %v1226_v43, 16  ;;  %v5803_v43 = vld [vmem:[%s6984_s1 + $0x150] sm:$0xff]  }
  0x64   : > { %5207 = vmatprep.subr.bf16.mxu0 %v5785_v3 }
  0x65   : > { %v1257_v54 = vrot.slane %v1255_v47, 4  ;;  %v1294_v47 = vrot.slane %v1292_v29, 5  ;;  %v5811_v29 = vld [vmem:[%s6984_s1 + $0x190] sm:$0xff]  }
  0x66   : > { %5200 = vmatmul.mubr.bf16.vlgmr.msra.gmra.mrb[0].mxu0 %v4603_v7  ;;  %v5801_v7 = vld [vmem:[%s6984_s1 + $0x140] sm:$0xff]  }
  0x67   : > { %5208 = vmatpush3.bf16.msra.mxu0 %v5785_v3  ;;  %5203 = vmatprep.mubr.bf16.mxu0 %v4604_v8  ;;  %v1261_v3 = vor.u32 %v1260_v55, %v1257_v54  ;;  %v1283_v8 = vshrl.u32 %v1230_v61, 16 }
  0x68   : > { %5209 = vmatprep.subr.bf16.mxu0 %v5786_v12 }
  0x6b   : > { %5210 = vmatpush3.bf16.msra.mxu0 %v5786_v12  ;;  %v1234_v12 = vld [vmem:[%s5997_s12 + $0xa8] sm:$0xf] }
  0x6c   : > { %5211 = vmatprep.subr.bf16.mxu0 %v5787_v13  ;;  %v1311_v25 = vshrl.u32 %v1234_v12, 16  ;;  %v1314_v26 = vshll.u32 %v1234_v12, 16 }
  0x6e   : > { %5204 = vmatmul.mubr.bf16.gmra.mrb[4].mxu0 %v4605_v18  ;;  %v1300_v18 = vshll.u32 %v1232_v6, 16  ;;  %v1313_v41 = vrot.slane %v1311_v25, 4  ;;  %v5806_v6 = vld [vmem:[%s6984_s1 + $0x168] sm:$0xff]  }
  0x6f   : > { %5212 = vmatpush3.bf16.msra.mxu0 %v5787_v13  ;;  %5223 = vmatprep.mubr.bf16.mxu0 %v4614_v20  ;;  %v4627_v13 = vcombine.low %v1057_v62, %v1058_v63  ;;  %v1262_v20 = vrot.slane %v1261_v3, 4  ;;  %v1339_v63 = vshrl.u32 %v1238_v52, 16 }
  0x70   : > { %5213 = vmatprep.subr.bf16.mxu0 %v5788_v19  ;;  %v1302_v33 = vrot.slane %v1300_v18, 5 }
  0x73   : > { %5214 = vmatpush3.bf16.msra.mxu0 %v5788_v19  ;;  %v1248_v19 = vrot.slane %v1247_v2, 4 }
  0x74   : > { %5215 = vmatprep.subr.bf16.mxu0 %v5789_v21 }
  0x75   : > { %v1253_v34 = vsel %vm6062_vm2, %v1248_v19, %v1252_v10  ;;  %v1239_v10 = vld [vmem:[%s5997_s12 + $0xf8] sm:$0x1] }
  0x76   : > { %v1348_v16 = vshll.u32 %v1239_v10, 16  ;;  %v4673_v10 = vld [vmem:[%s5997_s12 + $0x84] sm:$0xf] }
  0x77   : > { %5216 = vmatpush3.bf16.msra.mxu0 %v5789_v21  ;;  %v1271_v21 = vrot.slane %v1269_v4, 4  ;;  %v1341_v4 = vrot.slane %v1339_v63, 4 }
  0x78   : > { %5217 = vmatprep.subr.bf16.mxu0 %v5790_v22  ;;  %v1350_v25 = vrot.slane %v1348_v16, 5 }
  0x7b   : > { %5218 = vmatpush3.bf16.msra.mxu0 %v5790_v22  ;;  %v1274_v22 = vrot.slane %v1272_v5, 5  ;;  %v1344_v5 = vrot.slane %v1342_v0, 5 }
  0x7c   : > { %5219 = vmatprep.subr.bf16.mxu0 %v5791_v23 }
  0x7d   : > { %v1345_v15 = vor.u32 %v1344_v5, %v1341_v4 }
  0x7f   : > { %5220 = vmatpush3.bf16.msra.mxu0 %v5791_v23  ;;  %v1285_v23 = vrot.slane %v1283_v8, 4  ;;  %v1237_v8 = vld [vmem:[%s5997_s12 + $0xd8] sm:$0x1] }
  0x80   : > { %5221 = vmatprep.subr.bf16.mxu0 %v5792_v24  ;;  %v1334_v12 = vshll.u32 %v1237_v8, 16  ;;  %v5825_v8 = vld [vmem:[%s6984_s1 + $0x200] sm:$0xff]  }
  0x83   : > { %5222 = vmatpush3.bf16.msra.mxu0 %v5792_v24  ;;  %v1288_v24 = vrot.slane %v1286_v9, 5  ;;  %v5808_v9 = vld [vmem:[%s6984_s1 + $0x178] sm:$0xff]  }
  0x84   : > { %5231 = vmatprep.subr.bf16.mxu0 %v5793_v27 }
  0x86   : > { %5224 = vmatmul.mubr.bf16.vlgmr.msra.gmra.mrb[0].mxu0 %v4615_v30  ;;  %v1233_v30 = vld [vmem:[%s5997_s12 + $0x98] sm:$0x1] }
  0x87   : > { %5232 = vmatpush3.bf16.msra.mxu0 %v5793_v27  ;;  %5227 = vmatprep.mubr.bf16.mxu0 %v4616_v31  ;;  %v5802_v27 = vld [vmem:[%s6984_s1 + $0x148] sm:$0xff]   ;;  %v1235_v31 = vld [vmem:[%s5997_s12 + $0xb8] sm:$0x1]  ;;  %v1306_v45 = vshll.u32 %v1233_v30, 16  ;;  %v4650_v30 = vld [vmem:[%s5997_s12 + $0x20] sm:$0xf] }
  0x88   : > { %5233 = vmatprep.subr.bf16.mxu0 %v5794_v32 }
  0x89   : > { %v1308_v58 = vrot.slane %v1306_v45, 5 }
  0x8b   : > { %5234 = vmatpush3.bf16.msra.mxu0 %v5794_v32  ;;  %v1299_v32 = vrot.slane %v1297_v17, 4  ;;  %v5809_v17 = vld [vmem:[%s6984_s1 + $0x180] sm:$0xff]  }
  0x8c   : > { %5235 = vmatprep.subr.bf16.mxu0 %v5795_v35 }
  0x8d   : > { %v1303_v48 = vor.u32 %v1302_v33, %v1299_v32 }
  0x8e   : > { %5228 = vmatmul.mubr.bf16.gmra.mrb[4].mxu0 %v4617_v39  ;;  %v1267_v39 = vsel %vm6062_vm2, %v1262_v20, %v1266_v11 }
  0x8f   : > { %5236 = vmatpush3.bf16.msra.mxu0 %v5795_v35  ;;  %5247 = vmatprep.mubr.bf16.mxu0 %v4626_v40  ;;  %v1275_v35 = vor.u32 %v1274_v22, %v1271_v21  ;;  %v1289_v40 = vor.u32 %v1288_v24, %v1285_v23  ;;  %v4638_v51 = vcombine.low %v1253_v34, %v1267_v39  ;;  %v1304_v61 = vrot.slane %v1303_v48, 4  ;;  %v5812_v34 = vld [vmem:[%s6984_s1 + $0x198] sm:$0xff]   ;;  %v4652_v39 = vld [vmem:[%s5997_s12 + $0x60] sm:$0xf] }
  0x90   : > { %5237 = vmatprep.subr.bf16.mxu0 %v5796_v38  ;;  %v1336_v21 = vrot.slane %v1334_v12, 5  ;;  %v1346_v24 = vrot.slane %v1345_v15, 4  ;;  %v4657_v48 = vld [vmem:[%s5997_s12 + $0x100] sm:$0xf]  ;;  %v4675_v12 = vld [vmem:[%s5997_s12 + $0xc4] sm:$0xf] }
  0x91   : > { %v1276_v54 = vrot.slane %v1275_v35, 4  ;;  %v1290_v55 = vrot.slane %v1289_v40, 4  ;;  %v1309_v18 = vsel %vm6062_vm2, %v1304_v61, %v1308_v58  ;;  %v5813_v35 = vld [vmem:[%s6984_s1 + $0x1a0] sm:$0xff]  }
  0x92   : > { %v1351_v28 = vsel %vm6062_vm2, %v1346_v24, %v1350_v25  ;;  %v4653_v40 = vld [vmem:[%s5997_s12 + $0x80] sm:$0xf]  ;;  %v4676_v24 = vld [vmem:[%s5997_s12 + $0xe4] sm:$0xf] }
  0x93   : > { %5238 = vmatpush3.bf16.msra.mxu0 %v5796_v38  ;;  %v1062_v38 = vld [vmem:[%s5997_s12 + $0xec] sm:$0xf]  ;;  %v1281_v11 = vsel %vm6062_vm2, %v1276_v54, %v1280_v44  ;;  %v4659_v44 = vcombine.low %v4652_v39, %v4653_v40  ;;  %v5820_v54 = vld [vmem:[%s6984_s1 + $0x1d8] sm:$0xff]   ;;  %v4692_v58 = vld [vmem:[%s5997_s12 + $0x40] sm:$0xf] }
  0x94   : > { %5239 = vmatprep.subr.bf16.mxu0 %v5797_v42  ;;  %v4629_v50 = vcombine.low %v1061_v37, %v1062_v38  ;;  %v5815_v37 = vld [vmem:[%s6984_s1 + $0x1b0] sm:$0xff]   ;;  %v5816_v38 = vld [vmem:[%s6984_s1 + $0x1b8] sm:$0xff]   ;;  %v1875_v63 = vshrl.u32 %v4692_v58, 16  ;;  %v1878_v0 = vshll.u32 %v4692_v58, 16  ;;  %v4677_v25 = vld [vmem:[%s5997_s12 + $0x104] sm:$0xf] }
  0x95   : > { %v5829_v40 = vld [vmem:[%s6984_s1 + $0x220] sm:$0xff]   ;;  %v4699_v58 = vld [vmem:[%s5997_s12 + $0xb0] sm:$0x1] }
  0x96   : > { %v1877_v4 = vrot.slane %v1875_v63, 4  ;;  %v1880_v5 = vrot.slane %v1878_v0, 5 }
  0x97   : > { %5240 = vmatpush3.bf16.msra.mxu0 %v5797_v42  ;;  %v1316_v42 = vrot.slane %v1314_v26, 5  ;;  %v5810_v26 = vld [vmem:[%s6984_s1 + $0x188] sm:$0xff]  }
  0x98   : > { %5241 = vmatprep.subr.bf16.mxu0 %v5798_v46  ;;  %v1881_v15 = vor.u32 %v1880_v5, %v1877_v4  ;;  %v5831_v5 = vld [vmem:[%s6984_s1 + $0x230] sm:$0xff]  }
  0x99   : > { %v1317_v56 = vor.u32 %v1316_v42, %v1313_v41  ;;  %v5817_v41 = vld [vmem:[%s6984_s1 + $0x1c0] sm:$0xff]  }
  0x9a   : > { %v4654_v42 = vld [vmem:[%s5997_s12 + $0xa0] sm:$0xf] }
  0x9b   : > { %5242 = vmatpush3.bf16.msra.mxu0 %v5798_v46  ;;  %v1320_v46 = vshll.u32 %v1235_v31, 16  ;;  %v1318_v2 = vrot.slane %v1317_v56, 4  ;;  %v4651_v31 = vld [vmem:[%s5997_s12 + $0x40] sm:$0xf]  ;;  %v5822_v56 = vld [vmem:[%s6984_s1 + $0x1e8] sm:$0xff]  }
  0x9c   : > { %5243 = vmatprep.subr.bf16.mxu0 %v5799_v49  ;;  %v4658_v33 = vcombine.low %v4650_v30, %v4651_v31  ;;  %v4694_v31 = vld [vmem:[%s5997_s12 + $0x60] sm:$0xf] }
  0x9d   : > { %v1322_v60 = vrot.slane %v1320_v46, 5  ;;  %v5818_v46 = vld [vmem:[%s6984_s1 + $0x1c8] sm:$0xff]  }
  0x9f   : > { %5244 = vmatpush3.bf16.msra.mxu0 %v5799_v49  ;;  %v1325_v49 = vshrl.u32 %v1236_v36, 16  ;;  %v1323_v19 = vsel %vm6062_vm2, %v1318_v2, %v1322_v60  ;;  %v5823_v60 = vld [vmem:[%s6984_s1 + $0x1f0] sm:$0xff]  }
  0xa0   : > { %5245 = vmatprep.subr.bf16.mxu0 %v5800_v57  ;;  %v4640_v22 = vcombine.low %v1309_v18, %v1323_v19  ;;  %v5826_v19 = vld [vmem:[%s6984_s1 + $0x208] sm:$0xff]  }
  0xa1   : > { %v1327_v62 = vrot.slane %v1325_v49, 4  ;;  %v5819_v49 = vld [vmem:[%s6984_s1 + $0x1d0] sm:$0xff]  }
  0xa3   : > { %5246 = vmatpush3.bf16.msra.mxu0 %v5800_v57  ;;  %v1328_v57 = vshll.u32 %v1236_v36, 16  ;;  %v5814_v36 = vld [vmem:[%s6984_s1 + $0x1a8] sm:$0xff]  }
  0xa4   : > { %5255 = vmatprep.subr.bf16.mxu0 %v5801_v7 }
  0xa5   : > { %v1330_v3 = vrot.slane %v1328_v57, 5  ;;  %v4690_v57 = vld [vmem:[%s5997_s12 + $0x20] sm:$0xf] }
  0xa6   : > { %5248 = vmatmul.mubr.bf16.vlgmr.msra.gmra.mrb[0].mxu0 %v4627_v13  ;;  %v1295_v13 = vsel %vm6062_vm2, %v1290_v55, %v1294_v47  ;;  %v4656_v47 = vld [vmem:[%s5997_s12 + $0xe0] sm:$0xf]  ;;  %v1861_v61 = vshrl.u32 %v4690_v57, 16 }
  0xa7   : > { %5256 = vmatpush3.bf16.msra.mxu0 %v5801_v7  ;;  %5251 = vmatprep.mubr.bf16.mxu0 %v4628_v14  ;;  %v5807_v7 = vld [vmem:[%s6984_s1 + $0x170] sm:$0xff]   ;;  %v1331_v14 = vor.u32 %v1330_v3, %v1327_v62  ;;  %v4639_v20 = vcombine.low %v1281_v11, %v1295_v13  ;;  %v4661_v52 = vcombine.low %v4656_v47, %v4657_v48  ;;  %v5821_v55 = vld [vmem:[%s6984_s1 + $0x1e0] sm:$0xff]   ;;  %v1864_v62 = vshll.u32 %v4690_v57, 16 }
  0xa8   : > { %5257 = vmatprep.subr.bf16.mxu0 %v5802_v27  ;;  %v1863_v2 = vrot.slane %v1861_v61, 4  ;;  %v4674_v11 = vld [vmem:[%s5997_s12 + $0xa4] sm:$0xf]  ;;  %v4704_v57 = vld [vmem:[%s5997_s12 + $0x100] sm:$0xf] }
  0xa9   : > { %v1332_v23 = vrot.slane %v1331_v14, 4  ;;  %v1866_v3 = vrot.slane %v1864_v62, 5  ;;  %v4680_v18 = vcombine.low %v4674_v11, %v4675_v12  ;;  %v1962_v4 = vshll.u32 %v4704_v57, 16 }
  0xab   : > { %5258 = vmatpush3.bf16.msra.mxu0 %v5802_v27  ;;  %v1337_v27 = vsel %vm6062_vm2, %v1332_v23, %v1336_v21  ;;  %v1867_v13 = vor.u32 %v1866_v3, %v1863_v2  ;;  %v1959_v3 = vshrl.u32 %v4704_v57, 16 }
  0xac   : > { %5259 = vmatprep.subr.bf16.mxu0 %v5803_v43  ;;  %v4641_v32 = vcombine.low %v1337_v27, %v1351_v28 }
  0xae   : > { %5252 = vmatmul.mubr.bf16.gmra.mrb[4].mxu0 %v4629_v50  ;;  %v4670_v50 = vld [vmem:[%s5997_s12 + $0x24] sm:$0xf] }
  0xaf   : > { %5260 = vmatpush3.bf16.msra.mxu0 %v5803_v43  ;;  %5271 = vmatprep.mubr.bf16.mxu0 %v4638_v51  ;;  %v4655_v43 = vld [vmem:[%s5997_s12 + $0xc0] sm:$0xf]  ;;  %v4671_v51 = vld [vmem:[%s5997_s12 + $0x44] sm:$0xf] }
  0xb0   : > { %5261 = vmatprep.subr.bf16.mxu0 %v5804_v53  ;;  %v4660_v45 = vcombine.low %v4654_v42, %v4655_v43 }
  0xb3   : > { %5262 = vmatpush3.bf16.msra.mxu0 %v5804_v53  ;;  %v4678_v53 = vcombine.low %v4670_v50, %v4671_v51  ;;  %v4695_v50 = vld [vmem:[%s5997_s12 + $0x70] sm:$0x1] }
  0xb4   : > { %5263 = vmatprep.subr.bf16.mxu0 %v5805_v1  ;;  %v4697_v51 = vld [vmem:[%s5997_s12 + $0x90] sm:$0x1]  ;;  %v1898_v62 = vshll.u32 %v4695_v50, 16  ;;  %v5840_v50 = vld [vmem:[%s6986_s3 + $0x78] sm:$0xff]  }
  0xb5   : > { %v1912_v0 = vshll.u32 %v4697_v51, 16  ;;  %v6381_v51 = vld [vmem:[%s6986_s3] sm:$0xff]  }
  0xb6   : > { %v1900_v12 = vrot.slane %v1898_v62, 5 }
  0xb7   : > { %5264 = vmatpush3.bf16.msra.mxu0 %v5805_v1  ;;  %v5824_v1 = vld [vmem:[%s6984_s1 + $0x1f8] sm:$0xff]  }
  0xb8   : > { %5265 = vmatprep.subr.bf16.mxu0 %v5806_v6 }
  0xbb   : > { %5266 = vmatpush3.bf16.msra.mxu0 %v5806_v6  ;;  %v4691_v6 = vld [vmem:[%s5997_s12 + $0x30] sm:$0x1] }
  0xbc   : > { %5267 = vmatprep.subr.bf16.mxu0 %v5807_v7  ;;  %v1870_v14 = vshll.u32 %v4691_v6, 16 }
  0xbe   : > { %v1872_v21 = vrot.slane %v1870_v14, 5  ;;  %v1914_v14 = vrot.slane %v1912_v0, 5 }
  0xbf   : > { %5268 = vmatpush3.bf16.msra.mxu0 %v5807_v7  ;;  %v4693_v7 = vld [vmem:[%s5997_s12 + $0x50] sm:$0x1] }
  0xc0   : > { %5269 = vmatprep.subr.bf16.mxu0 %v5808_v9  ;;  %v1884_v16 = vshll.u32 %v4693_v7, 16  ;;  %v1926_v7 = vshll.u32 %v4699_v58, 16 }
  0xc2   : > { %v1886_v23 = vrot.slane %v1884_v16, 5 }
  0xc3   : > { %5270 = vmatpush3.bf16.msra.mxu0 %v5808_v9  ;;  %v4672_v9 = vld [vmem:[%s5997_s12 + $0x64] sm:$0xf] }
  0xc4   : > { %5279 = vmatprep.subr.bf16.mxu0 %v5809_v17 }
  0xc6   : > { %5272 = vmatmul.mubr.bf16.vlgmr.msra.gmra.mrb[0].mxu0 %v4639_v20  ;;  %v1868_v20 = vrot.slane %v1867_v13, 4 }
  0xc7   : > { %5280 = vmatpush3.bf16.msra.mxu0 %v5809_v17  ;;  %5275 = vmatprep.mubr.bf16.mxu0 %v4640_v22  ;;  %v4679_v17 = vcombine.low %v4672_v9, %v4673_v10  ;;  %v1882_v22 = vrot.slane %v1881_v15, 4  ;;  %v5832_v10 = vld [vmem:[%s6984_s1 + $0x238] sm:$0xff]   ;;  %v4703_v15 = vld [vmem:[%s5997_s12 + $0xf0] sm:$0x1] }
  0xc8   : > { %5281 = vmatprep.subr.bf16.mxu0 %v5810_v26  ;;  %v1873_v27 = vsel %vm6062_vm2, %v1868_v20, %v1872_v21  ;;  %v1928_v21 = vrot.slane %v1926_v7, 5 }
  0xc9   : > { %v1887_v28 = vsel %vm6062_vm2, %v1882_v22, %v1886_v23 }
  0xca   : > { %v4706_v30 = vcombine.low %v1873_v27, %v1887_v28 }
  0xcb   : > { %5282 = vmatpush3.bf16.msra.mxu0 %v5810_v26  ;;  %v5827_v26 = vld [vmem:[%s6984_s1 + $0x210] sm:$0xff]  }
  0xcc   : > { %5283 = vmatprep.subr.bf16.mxu0 %v5811_v29 }
  0xce   : > { %5276 = vmatmul.mubr.bf16.gmra.mrb[4].mxu0 %v4641_v32  ;;  %v4696_v32 = vld [vmem:[%s5997_s12 + $0x80] sm:$0xf] }
  0xcf   : > { %5284 = vmatpush3.bf16.msra.mxu0 %v5811_v29  ;;  %5295 = vmatprep.mubr.bf16.mxu0 %v4658_v33  ;;  %v4681_v29 = vcombine.low %v4676_v24, %v4677_v25  ;;  %v5828_v33 = vld [vmem:[%s6984_s1 + $0x218] sm:$0xff]   ;;  %v1906_v39 = vshll.u32 %v4696_v32, 16  ;;  %v4705_v24 = vld [vmem:[%s5997_s12 + $0x110] sm:$0x1] }
  0xd0   : > { %5285 = vmatprep.subr.bf16.mxu0 %v5812_v34 }
  0xd3   : > { %5286 = vmatpush3.bf16.msra.mxu0 %v5812_v34  ;;  %v4698_v34 = vld [vmem:[%s5997_s12 + $0xa0] sm:$0xf] }
  0xd4   : > { %5287 = vmatprep.subr.bf16.mxu0 %v5813_v35  ;;  %v1920_v42 = vshll.u32 %v4698_v34, 16 }
  0xd7   : > { %5288 = vmatpush3.bf16.msra.mxu0 %v5813_v35  ;;  %v4700_v35 = vld [vmem:[%s5997_s12 + $0xc0] sm:$0xf] }
  0xd8   : > { %5289 = vmatprep.subr.bf16.mxu0 %v5814_v36  ;;  %v1931_v43 = vshrl.u32 %v4700_v35, 16 }
  0xdb   : > { %5290 = vmatpush3.bf16.msra.mxu0 %v5814_v36  ;;  %v1889_v36 = vshrl.u32 %v4694_v31, 16 }
  0xdc   : > { %5291 = vmatprep.subr.bf16.mxu0 %v5815_v37 }
  0xdf   : > { %5292 = vmatpush3.bf16.msra.mxu0 %v5815_v37  ;;  %v1892_v37 = vshll.u32 %v4694_v31, 16 }
  0xe0   : > { %5293 = vmatprep.subr.bf16.mxu0 %v5816_v38 }
  0xe1   : > { %v1894_v47 = vrot.slane %v1892_v37, 5 }
  0xe3   : > { %5294 = vmatpush3.bf16.msra.mxu0 %v5816_v38  ;;  %v1903_v38 = vshrl.u32 %v4696_v32, 16 }
  0xe4   : > { %5303 = vmatprep.subr.bf16.mxu0 %v5817_v41 }
  0xe5   : > { %v1905_v48 = vrot.slane %v1903_v38, 4 }
  0xe6   : > { %5296 = vmatmul.mubr.bf16.vlgmr.msra.gmra.mrb[0].mxu0 %v4659_v44  ;;  %v1934_v44 = vshll.u32 %v4700_v35, 16 }
  0xe7   : > { %5304 = vmatpush3.bf16.msra.mxu0 %v5817_v41  ;;  %5299 = vmatprep.mubr.bf16.mxu0 %v4660_v45  ;;  %v1917_v41 = vshrl.u32 %v4698_v34, 16  ;;  %v5830_v45 = vld [vmem:[%s6984_s1 + $0x228] sm:$0xff]  }
  0xe8   : > { %5305 = vmatprep.subr.bf16.mxu0 %v5818_v46 }
  0xeb   : > { %5306 = vmatpush3.bf16.msra.mxu0 %v5818_v46  ;;  %v1891_v46 = vrot.slane %v1889_v36, 4 }
  0xec   : > { %5307 = vmatprep.subr.bf16.mxu0 %v5819_v49 }
  0xed   : > { %v1895_v61 = vor.u32 %v1894_v47, %v1891_v46  ;;  %v5836_v46 = vld [vmem:[%s6986_s3 + $0x58] sm:$0xff]   ;;  %v5837_v47 = vld [vmem:[%s6986_s3 + $0x60] sm:$0xff]  }
  0xee   : > { %5300 = vmatmul.mubr.bf16.gmra.mrb[4].mxu0 %v4661_v52  ;;  %v4702_v52 = vld [vmem:[%s5997_s12 + $0xe0] sm:$0xf] }
  0xef   : > { %5308 = vmatpush3.bf16.msra.mxu0 %v5819_v49  ;;  %5319 = vmatprep.mubr.bf16.mxu0 %v4678_v53  ;;  %v1908_v49 = vrot.slane %v1906_v39, 5  ;;  %v1919_v53 = vrot.slane %v1917_v41, 4  ;;  %v1948_v2 = vshll.u32 %v4702_v52, 16  ;;  %v1896_v11 = vrot.slane %v1895_v61, 4 }
  0xf0   : > { %5309 = vmatprep.subr.bf16.mxu0 %v5820_v54 }
  0xf1   : > { %v1909_v63 = vor.u32 %v1908_v49, %v1905_v48  ;;  %v1901_v25 = vsel %vm6062_vm2, %v1896_v11, %v1900_v12  ;;  %v5838_v48 = vld [vmem:[%s6986_s3 + $0x68] sm:$0xff]   ;;  %v5839_v49 = vld [vmem:[%s6986_s3 + $0x70] sm:$0xff]  }
  0xf3   : > { %5310 = vmatpush3.bf16.msra.mxu0 %v5820_v54  ;;  %v1922_v54 = vrot.slane %v1920_v42, 5  ;;  %v1910_v13 = vrot.slane %v1909_v63, 4  ;;  %v5833_v42 = vld [vmem:[%s6986_s3 + $0x40] sm:$0xff]  }
  0xf4   : > { %5311 = vmatprep.subr.bf16.mxu0 %v5821_v55  ;;  %5351 = vmatprep.subr.bf16.mxu1 %v5833_v42 }
  0xf5   : > { %v1923_v6 = vor.u32 %v1922_v54, %v1919_v53  ;;  %v1915_v27 = vsel %vm6062_vm2, %v1910_v13, %v1914_v14  ;;  %5352 = vmatpush3.bf16.msra.mxu1 %v5833_v42 }
  0xf7   : > { %5312 = vmatpush3.bf16.msra.mxu0 %v5821_v55  ;;  %v1933_v55 = vrot.slane %v1931_v43, 4  ;;  %v1924_v20 = vrot.slane %v1923_v6, 4  ;;  %v5933_v43 = vmov 0  }
  0xf8   : > { %5313 = vmatprep.subr.bf16.mxu0 %v5822_v56  ;;  %2154 = vst [vmem:[#allocation2 + $0x18] sm:$0xf] %v5933_v43  ;;  %2155 = vst [vmem:[#allocation2 + $0x1c] sm:$0x1] %v5933_v43 }
  0xf9   : > { %v1929_v31 = vsel %vm6062_vm2, %v1924_v20, %v1928_v21  ;;  %2148 = vst [vmem:[#allocation2] sm:$0xf] %v5933_v43  ;;  %2149 = vst [vmem:[#allocation2 + $0x4] sm:$0x1] %v5933_v43 }
  0xfa   : > { %2150 = vst [vmem:[#allocation2 + $0x8] sm:$0xf] %v5933_v43  ;;  %2151 = vst [vmem:[#allocation2 + $0xc] sm:$0x1] %v5933_v43 }
  0xfb   : > { %5314 = vmatpush3.bf16.msra.mxu0 %v5822_v56  ;;  %v1936_v56 = vrot.slane %v1934_v44, 5  ;;  %2152 = vst [vmem:[#allocation2 + $0x10] sm:$0xf] %v5933_v43  ;;  %2153 = vst [vmem:[#allocation2 + $0x14] sm:$0x1] %v5933_v43  ;;  %v5834_v44 = vld [vmem:[%s6986_s3 + $0x48] sm:$0xff]  }
  0xfc   : > { %5315 = vmatprep.subr.bf16.mxu0 %v5823_v60  ;;  %2156 = vst [vmem:[#allocation2 + $0x20] sm:$0xf] %v5933_v43  ;;  %2157 = vst [vmem:[#allocation2 + $0x24] sm:$0x1] %v5933_v43  ;;  %5353 = vmatprep.subr.bf16.mxu1 %v5834_v44 }
  0xfd   : > { %2158 = vst [vmem:[#allocation2 + $0x28] sm:$0xf] %v5933_v43  ;;  %2159 = vst [vmem:[#allocation2 + $0x2c] sm:$0x1] %v5933_v43  ;;  %5354 = vmatpush3.bf16.msra.mxu1 %v5834_v44 }
  0xfe   : > { %2160 = vst [vmem:[#allocation2 + $0x30] sm:$0xf] %v5933_v43  ;;  %2161 = vst [vmem:[#allocation2 + $0x34] sm:$0x1] %v5933_v43 }
  0xff   : > { %5316 = vmatpush3.bf16.msra.mxu0 %v5823_v60  ;;  %v4701_v60 = vld [vmem:[%s5997_s12 + $0xd0] sm:$0x1]  ;;  %2162 = vst [vmem:[#allocation2 + $0x38] sm:$0xf] %v5933_v43  ;;  %2163 = vst [vmem:[#allocation2 + $0x3c] sm:$0x1] %v5933_v43 }
 0x100   : > { %5317 = vmatprep.subr.bf16.mxu0 %v5824_v1  ;;  %v1940_v9 = vshll.u32 %v4701_v60, 16  ;;  %2164 = vst [vmem:[#allocation2 + $0x40] sm:$0xf] %v5933_v43  ;;  %2165 = vst [vmem:[#allocation2 + $0x44] sm:$0x1] %v5933_v43 }
 0x101   : > { %2166 = vst [vmem:[#allocation2 + $0x48] sm:$0xf] %v5933_v43  ;;  %2167 = vst [vmem:[#allocation2 + $0x4c] sm:$0x1] %v5933_v43  ;;  %v6389_v54 = vld [vmem:[#allocation2] sm:$0xf] }
 0x102   : > { %v1942_v23 = vrot.slane %v1940_v9, 5  ;;  %v2368_v63 = vshrl.u32 %v6389_v54, 16  ;;  %v2371_v0 = vshll.u32 %v6389_v54, 16  ;;  %v2299_v14 = vld [vmem:[#allocation2 + $0x18] sm:$0xf] }
 0x103   : > { %5318 = vmatpush3.bf16.msra.mxu0 %v5824_v1  ;;  %v1945_v1 = vshrl.u32 %v4702_v52, 16  ;;  %v6387_v52 = vld [vmem:[%s6985_s2] ss:$0 sm:$0xff]  ;;  %v2308_v42 = vld [vmem:[#allocation2 + $0x24] sm:$0x1] }
 0x104   : > { %5327 = vmatprep.subr.bf16.mxu0 %v5825_v8  ;;  %v6400_v11 = vrot.slane %v2368_v63, 4  ;;  %v6402_v12 = vrot.slane %v2371_v0, 5 }
 0x105   : > { %v1947_v16 = vrot.slane %v1945_v1, 4 }
 0x106   : > { %5320 = vmatmul.mubr.bf16.vlgmr.msra.gmra.mrb[0].mxu0 %v4679_v17  ;;  %v1950_v17 = vrot.slane %v1948_v2, 5 }
 0x107   : > { %5328 = vmatpush3.bf16.msra.mxu0 %v5825_v8  ;;  %5323 = vmatprep.mubr.bf16.mxu0 %v4680_v18  ;;  %v1937_v8 = vor.u32 %v1936_v56, %v1933_v55  ;;  %v1961_v18 = vrot.slane %v1959_v3, 4 }
 0x108   : > { %5329 = vmatprep.subr.bf16.mxu0 %v5826_v19  ;;  %v1951_v28 = vor.u32 %v1950_v17, %v1947_v16 }
 0x109   : > { %v1938_v22 = vrot.slane %v1937_v8, 4 }
 0x10a   : > { %v1952_v36 = vrot.slane %v1951_v28, 4 }
 0x10b   : > { %5330 = vmatpush3.bf16.msra.mxu0 %v5826_v19  ;;  %v1964_v19 = vrot.slane %v1962_v4, 5  ;;  %v1943_v32 = vsel %vm6062_vm2, %v1938_v22, %v1942_v23  ;;  %v2284_v22 = vld [vmem:[#allocation2 + $0x8] sm:$0xf] }
 0x10c   : > { %5331 = vmatprep.subr.bf16.mxu0 %v5827_v26  ;;  %v4708_v35 = vcombine.low %v1929_v31, %v1943_v32 }
 0x10e   : > { %5324 = vmatmul.mubr.bf16.gmra.mrb[4].mxu0 %v4681_v29  ;;  %v1965_v29 = vor.u32 %v1964_v19, %v1961_v18 }
 0x10f   : > { %5332 = vmatpush3.bf16.msra.mxu0 %v5827_v26  ;;  %5343 = vmatprep.mubr.bf16.mxu0 %v4706_v30  ;;  %v1954_v26 = vshll.u32 %v4703_v15, 16  ;;  %v1968_v30 = vshll.u32 %v4705_v24, 16  ;;  %v2302_v15 = vld [vmem:[#allocation2 + $0x1c] sm:$0x1] }
 0x110   : > { %5333 = vmatprep.subr.bf16.mxu0 %v5828_v33  ;;  %v1966_v37 = vrot.slane %v1965_v29, 4  ;;  %v2290_v29 = vld [vmem:[#allocation2 + $0xc] sm:$0x1] }
 0x111   : > { %v1956_v34 = vrot.slane %v1954_v26, 5  ;;  %v1970_v38 = vrot.slane %v1968_v30, 5 }
 0x113   : > { %5334 = vmatpush3.bf16.msra.mxu0 %v5828_v33  ;;  %v4707_v33 = vcombine.low %v1901_v25, %v1915_v27  ;;  %v1957_v39 = vsel %vm6062_vm2, %v1952_v36, %v1956_v34 }
 0x114   : > { %5335 = vmatprep.subr.bf16.mxu0 %v5829_v40 }
 0x117   : > { %5336 = vmatpush3.bf16.msra.mxu0 %v5829_v40  ;;  %v1971_v40 = vsel %vm6062_vm2, %v1966_v37, %v1970_v38  ;;  %v2305_v37 = vld [vmem:[#allocation2 + $0x20] sm:$0xf] }
 0x118   : > { %5337 = vmatprep.subr.bf16.mxu0 %v5830_v45  ;;  %v4709_v41 = vcombine.low %v1957_v39, %v1971_v40 }
 0x11b   : > { %5338 = vmatpush3.bf16.msra.mxu0 %v5830_v45  ;;  %v5835_v45 = vld [vmem:[%s6986_s3 + $0x50] sm:$0xff]  }
 0x11c   : > { %5339 = vmatprep.subr.bf16.mxu0 %v5831_v5  ;;  %5355 = vmatprep.subr.bf16.mxu1 %v5835_v45 }
 0x11d   : > { %5356 = vmatpush3.bf16.msra.mxu1 %v5835_v45 }
 0x11e   : > { %5357 = vmatprep.subr.bf16.mxu1 %v5836_v46 }
 0x11f   : > { %5340 = vmatpush3.bf16.msra.mxu0 %v5831_v5  ;;  %v6397_v5 = vld [vmem:[#allocation2 + $0x4] sm:$0x1] }
 0x120   : > { %5341 = vmatprep.subr.bf16.mxu0 %v5832_v10  ;;  %v2377_v8 = vshll.u32 %v6397_v5, 16 }
 0x121   : > { %5358 = vmatpush3.bf16.msra.mxu1 %v5836_v46 }
 0x122   : > { %5359 = vmatprep.subr.bf16.mxu1 %v5837_v47 }
 0x123   : > { %5342 = vmatpush3.bf16.msra.mxu0 %v5832_v10 }
 0x125   : > { %5360 = vmatpush3.bf16.msra.mxu1 %v5837_v47 }
 0x126   : > { %5344 = vmatmul.mubr.bf16.vlgmr.msra.gmra.mrb[0].mxu0 %v4707_v33  ;;  %5361 = vmatprep.subr.bf16.mxu1 %v5838_v48 }
 0x127   : > { %5347 = vmatprep.mubr.bf16.mxu0 %v4708_v35 }
 0x129   : > { %5362 = vmatpush3.bf16.msra.mxu1 %v5838_v48 }
 0x12a   : > { %5363 = vmatprep.subr.bf16.mxu1 %v5839_v49 }
 0x12d   : > { %5364 = vmatpush3.bf16.msra.mxu1 %v5839_v49  ;;  %v2293_v49 = vld [vmem:[#allocation2 + $0x10] sm:$0xf] }
 0x12e   : > { %5348 = vmatmul.mubr.bf16.gmra.mrb[4].mxu0 %v4709_v41  ;;  %5365 = vmatprep.subr.bf16.mxu1 %v5840_v50 }
 0x131   : > { %5366 = vmatpush3.bf16.msra.mxu1 %v5840_v50  ;;  %v2296_v50 = vld [vmem:[#allocation2 + $0x14] sm:$0x1] }
 0x132   : > { %5375 = vmatprep.subr.bf16.mxu1 %v6381_v51 }
 0x1f9   : > { %v5345_v53 = vpop.f32.mrb[0].mxu0 }
 0x1fa   : > { %v2134_v55 = vadd.f32 %v5345_v53, %v6387_v52  ;;  %v2086_v56 = vpop.f32.mrb[1].mxu0 }
 0x1fb   : > { %v2132_v57 = vadd.f32 %v6387_v52, %v2086_v56  ;;  %v5346_v58 = vpop.f32.mrb[2].mxu0 }
 0x1fc   : > { %v2142_v60 = vmax.f32 %v2134_v55, 0.0  ;;  %v2135_v61 = vadd.f32 %v5346_v58, %v6387_v52  ;;  %v2089_v62 = vpop.f32.mrb[3].mxu0 }
 0x1fd   : > { %v2140_v1 = vmax.f32 %v2132_v57, 0.0  ;;  %v2133_v2 = vadd.f32 %v6387_v52, %v2089_v62 }
 0x1fe   : > { %v4878_v3 = vpack.c.bf16 %v2142_v60, %v2142_v60  ;;  %v2143_v4 = vmax.f32 %v2135_v61, 0.0 }
 0x1ff   : > { %v4876_v6 = vpack.c.bf16 %v2140_v1, %v2140_v1  ;;  %v2141_v7 = vmax.f32 %v2133_v2, 0.0 }
 0x200   : > { %v2217_v9 = vshrl.u32 %v4878_v3, 16  ;;  %v4879_v10 = vpack.c.bf16 %v2143_v4, %v2143_v4  ;;  %v2220_v13 = vshll.u32 %v4878_v3, 16 }
 0x201   : > { %v2201_v16 = vshrl.u32 %v4876_v6, 16  ;;  %v2204_v17 = vshll.u32 %v4876_v6, 16  ;;  %v4877_v18 = vpack.c.bf16 %v2141_v7, %v2141_v7  ;;  %v5349_v19 = vpop.f32.mrb[4].mxu0  ;;  %v2323_v6 = vld [vmem:[#allocation2 + $0x38] sm:$0xf] }
 0x202   : > { %v2219_v20 = vrot.slane %v2217_v9, 7  ;;  %v2225_v23 = vshrl.u32 %v4879_v10, 16  ;;  %v2228_v24 = vshll.u32 %v4879_v10, 16  ;;  %v2138_v25 = vadd.f32 %v5349_v19, %v6387_v52  ;;  %v2102_v26 = vpop.f32.mrb[5].mxu0 }
 0x203   : > { %v2203_v28 = vrot.slane %v2201_v16, 7  ;;  %v2209_v30 = vshrl.u32 %v4877_v18, 16  ;;  %v2212_v31 = vshll.u32 %v4877_v18, 16  ;;  %v2136_v32 = vadd.f32 %v6387_v52, %v2102_v26  ;;  %v5350_v33 = vpop.f32.mrb[6].mxu0  ;;  %v2314_v18 = vld [vmem:[#allocation2 + $0x2c] sm:$0x1] }
 0x204   : > { %v2222_v34 = vor.u32 %v2220_v13, %v2219_v20  ;;  %v2223_v35 = vrot.slane %v2219_v20, 4  ;;  %v2227_v36 = vrot.slane %v2225_v23, 7  ;;  %v2146_v38 = vmax.f32 %v2138_v25, 0.0  ;;  %v2105_v39 = vpop.f32.mrb[7].mxu0 }
 0x205   : > { %v2206_v40 = vor.u32 %v2204_v17, %v2203_v28  ;;  %v2207_v41 = vrot.slane %v2203_v28, 4  ;;  %v2211_v43 = vrot.slane %v2209_v30, 7  ;;  %v2144_v44 = vmax.f32 %v2136_v32, 0.0  ;;  %v2311_v17 = vld [vmem:[#allocation2 + $0x28] sm:$0xf] }
 0x206   : > { %v2300_v45 = vsel %vm6406_vm7, %v2222_v34, %v2299_v14  ;;  %v2303_v46 = vsel %vm6413_vm8, %v2223_v35, %v2302_v15  ;;  %v2230_v47 = vor.u32 %v2228_v24, %v2227_v36  ;;  %v2231_v48 = vrot.slane %v2227_v36, 4  ;;  %v2326_v14 = vld [vmem:[#allocation2 + $0x3c] sm:$0x1]  ;;  %v2329_v34 = vld [vmem:[#allocation2 + $0x40] sm:$0xf] }
 0x207   : > { %2301 = vst [vmem:[#allocation2 + $0x18] sm:$0xf] %v2300_v45  ;;  %2304 = vst [vmem:[#allocation2 + $0x1c] sm:$0x1] %v2303_v46  ;;  %v2285_v53 = vsel %vm6406_vm7, %v2206_v40, %v2284_v22  ;;  %v2291_v55 = vsel %vm6413_vm8, %v2207_v41, %v2290_v29  ;;  %v2214_v56 = vor.u32 %v2212_v31, %v2211_v43  ;;  %v2215_v57 = vrot.slane %v2211_v43, 4 }
 0x208   : > { %2286 = vst [vmem:[#allocation2 + $0x8] sm:$0xf] %v2285_v53  ;;  %2292 = vst [vmem:[#allocation2 + $0xc] sm:$0x1] %v2291_v55  ;;  %v2306_v58 = vsel %vm6406_vm7, %v2230_v47, %v2305_v37  ;;  %v2309_v60 = vsel %vm6413_vm8, %v2231_v48, %v2308_v42  ;;  %v4882_v61 = vpack.c.bf16 %v2146_v38, %v2146_v38  ;;  %v2332_v35 = vld [vmem:[#allocation2 + $0x44] sm:$0x1] }
 0x209   : > { %v4880_v62 = vpack.c.bf16 %v2144_v44, %v2144_v44  ;;  %2307 = vst [vmem:[#allocation2 + $0x20] sm:$0xf] %v2306_v58  ;;  %2310 = vst [vmem:[#allocation2 + $0x24] sm:$0x1] %v2309_v60  ;;  %v2294_v63 = vsel %vm6406_vm7, %v2214_v56, %v2293_v49  ;;  %v2297_v0 = vsel %vm6413_vm8, %v2215_v57, %v2296_v50  ;;  %v2317_v36 = vld [vmem:[#allocation2 + $0x30] sm:$0xf] }
 0x20a   : > { %v2139_v1 = vadd.f32 %v5350_v33, %v6387_v52  ;;  %v2137_v2 = vadd.f32 %v6387_v52, %v2105_v39  ;;  %2295 = vst [vmem:[#allocation2 + $0x10] sm:$0xf] %v2294_v63  ;;  %2298 = vst [vmem:[#allocation2 + $0x14] sm:$0x1] %v2297_v0  ;;  %v2249_v3 = vshrl.u32 %v4882_v61, 16  ;;  %v2252_v13 = vshll.u32 %v4882_v61, 16 }
 0x20b   : > { %v2233_v4 = vshrl.u32 %v4880_v62, 16  ;;  %v2236_v16 = vshll.u32 %v4880_v62, 16  ;;  %v2374_v22 = vor.u32 %v6402_v12, %v6400_v11  ;;  %v6440_v52 = vrot.slane %v2377_v8, 5  ;;  %v2320_v43 = vld [vmem:[#allocation2 + $0x34] sm:$0x1] }
 0x20c   : > { %v2147_v7 = vmax.f32 %v2139_v1, 0.0  ;;  %v2145_v9 = vmax.f32 %v2137_v2, 0.0  ;;  %v2251_v10 = vrot.slane %v2249_v3, 7 }
 0x20d   : > { %v2235_v15 = vrot.slane %v2233_v4, 7  ;;  %v2375_v44 = vrot.slane %v2374_v22, 4 }
 0x20e   : > { %v4883_v19 = vpack.c.bf16 %v2147_v7, %v2147_v7  ;;  %v4881_v20 = vpack.c.bf16 %v2145_v9, %v2145_v9  ;;  %v2254_v23 = vor.u32 %v2252_v13, %v2251_v10  ;;  %v2255_v24 = vrot.slane %v2251_v10, 4  ;;  %v6461_v55 = vld [vmem:[#allocation2 + $0x18] sm:$0xf]  ;;  %v6473_v1 = vld [vmem:[#allocation2 + $0x1c] sm:$0x1] }
 0x20f   : > { %v2238_v25 = vor.u32 %v2236_v16, %v2235_v15  ;;  %v2239_v26 = vrot.slane %v2235_v15, 4  ;;  %v6442_v32 = vld [vmem:[#allocation2 + $0x8] sm:$0xf]  ;;  %v6452_v37 = vld [vmem:[#allocation2 + $0xc] sm:$0x1]  ;;  %v2380_v21 = vsel %vm6062_vm2, %v2375_v44, %v6440_v52  ;;  %v2413_v9 = vshll.u32 %v6461_v55, 16 }
 0x210   : > { %v2257_v28 = vshrl.u32 %v4883_v19, 16  ;;  %v2260_v29 = vshll.u32 %v4883_v19, 16  ;;  %v2241_v30 = vshrl.u32 %v4881_v20, 16  ;;  %v2244_v31 = vshll.u32 %v4881_v20, 16  ;;  %v6477_v7 = vld [vmem:[#allocation2 + $0x20] sm:$0xf] }
 0x211   : > { %v2324_v33 = vsel %vm6406_vm7, %v2254_v23, %v2323_v6  ;;  %v2327_v11 = vsel %vm6413_vm8, %v2255_v24, %v2326_v14  ;;  %v2312_v8 = vsel %vm6406_vm7, %v2238_v25, %v2311_v17  ;;  %v2315_v12 = vsel %vm6413_vm8, %v2239_v26, %v2314_v18  ;;  %v6456_v42 = vld [vmem:[#allocation2 + $0x10] sm:$0xf]  ;;  %v6463_v56 = vld [vmem:[#allocation2 + $0x14] sm:$0x1]  ;;  %v6490_v23 = vld [vmem:[#allocation2 + $0x24] sm:$0x1] }
 0x212   : > { %2325 = vst [vmem:[#allocation2 + $0x38] sm:$0xf] %v2324_v33  ;;  %2328 = vst [vmem:[#allocation2 + $0x3c] sm:$0x1] %v2327_v11  ;;  %v2259_v38 = vrot.slane %v2257_v28, 7  ;;  %v2243_v39 = vrot.slane %v2241_v30, 7 }
 0x213   : > { %2313 = vst [vmem:[#allocation2 + $0x28] sm:$0xf] %v2312_v8  ;;  %2316 = vst [vmem:[#allocation2 + $0x2c] sm:$0x1] %v2315_v12  ;;  %v2382_v40 = vshrl.u32 %v6442_v32, 16  ;;  %v2385_v41 = vshll.u32 %v6442_v32, 16 }
 0x214   : > { %v2391_v45 = vshll.u32 %v6452_v37, 16  ;;  %v2396_v46 = vshrl.u32 %v6456_v42, 16  ;;  %v2399_v47 = vshll.u32 %v6456_v42, 16  ;;  %v2262_v48 = vor.u32 %v2260_v29, %v2259_v38 }
 0x215   : > { %v2263_v49 = vrot.slane %v2259_v38, 4  ;;  %v2246_v50 = vor.u32 %v2244_v31, %v2243_v39  ;;  %v2247_v53 = vrot.slane %v2243_v39, 4  ;;  %v2384_v57 = vrot.slane %v2382_v40, 4  ;;  %v5842_v39 = vld [vmem:[%s6986_s3 + $0x8] sm:$0xff]  }
 0x216   : > { %v2387_v58 = vrot.slane %v2385_v41, 5  ;;  %v2398_v60 = vrot.slane %v2396_v46, 4  ;;  %v2330_v61 = vsel %vm6406_vm7, %v2262_v48, %v2329_v34  ;;  %v2401_v3 = vrot.slane %v2399_v47, 5 }
 0x217   : > { %v2333_v62 = vsel %vm6413_vm8, %v2263_v49, %v2332_v35  ;;  %v2318_v63 = vsel %vm6406_vm7, %v2246_v50, %v2317_v36  ;;  %v2321_v0 = vsel %vm6413_vm8, %v2247_v53, %v2320_v43  ;;  %2331 = vst [vmem:[#allocation2 + $0x40] sm:$0xf] %v2330_v61  ;;  %v2405_v4 = vshll.u32 %v6463_v56, 16  ;;  %v2763_v49 = vld [vmem:[#allocation2 + $0x10] sm:$0xe] }
 0x218   : > { %2334 = vst [vmem:[#allocation2 + $0x44] sm:$0x1] %v2333_v62  ;;  %2319 = vst [vmem:[#allocation2 + $0x30] sm:$0xf] %v2318_v63  ;;  %v2388_v2 = vor.u32 %v2387_v58, %v2384_v57  ;;  %v2410_v6 = vshrl.u32 %v6461_v55, 16  ;;  %v2393_v27 = vrot.slane %v2391_v45, 5  ;;  %v2402_v13 = vor.u32 %v2401_v3, %v2398_v60 }
 0x219   : > { %2322 = vst [vmem:[#allocation2 + $0x34] sm:$0x1] %v2321_v0  ;;  %v2419_v15 = vshll.u32 %v6473_v1, 16  ;;  %v2415_v17 = vrot.slane %v2413_v9, 5  ;;  %v2424_v18 = vshrl.u32 %v6477_v7, 16  ;;  %v2427_v19 = vshll.u32 %v6477_v7, 16 }
 0x21a   : > { %v2389_v10 = vrot.slane %v2388_v2, 4  ;;  %v2412_v14 = vrot.slane %v2410_v6, 4  ;;  %v6484_v16 = vld [vmem:[#allocation2 + $0x28] sm:$0xf]  ;;  %v2403_v22 = vrot.slane %v2402_v13, 4  ;;  %v2407_v52 = vrot.slane %v2405_v4, 5 }
 0x21b   : > { %v2438_v24 = vshrl.u32 %v6484_v16, 16  ;;  %v6493_v28 = vld [vmem:[#allocation2 + $0x2c] sm:$0x1]  ;;  %v2426_v29 = vrot.slane %v2424_v18, 4  ;;  %v2429_v30 = vrot.slane %v2427_v19, 5  ;;  %v2421_v31 = vrot.slane %v2419_v15, 5 }
 0x21c   : > { %v2394_v20 = vsel %vm6062_vm2, %v2389_v10, %v2393_v27  ;;  %v2416_v26 = vor.u32 %v2415_v17, %v2412_v14  ;;  %v2441_v11 = vshll.u32 %v6484_v16, 16  ;;  %v6496_v8 = vld [vmem:[#allocation2 + $0x38] sm:$0xf]  ;;  %v2408_v12 = vsel %vm6062_vm2, %v2403_v22, %v2407_v52  ;;  %v2366_v57 = vld [vmem:[#allocation2 + $0x3c] sm:$0x1]  ;;  %v5843_v14 = vld [vmem:[%s6986_s3 + $0x10] sm:$0xff]  }
 0x21d   : > { %v4727_v25 = vcombine.low %v2380_v21, %v2394_v20  ;;  %v2440_v33 = vrot.slane %v2438_v24, 4  ;;  %v2430_v35 = vor.u32 %v2429_v30, %v2426_v29  ;;  %v2433_v36 = vshll.u32 %v6490_v23, 16  ;;  %v2764_v61 = vld [vmem:[#allocation2 + $0x18] sm:$0xe] }
 0x21e   : > { %v2417_v34 = vrot.slane %v2416_v26, 4  ;;  %v2443_v40 = vrot.slane %v2441_v11, 5  ;;  %v2447_v41 = vshll.u32 %v6493_v28, 16  ;;  %v2466_v48 = vshrl.u32 %v6496_v8, 16  ;;  %v2768_v24 = vld [vmem:[#allocation2 + $0x38] sm:$0xe] }
 0x21f   : > { %5367 = vmatprep.mubr.bf16.mxu1 %v4727_v25  ;;  %v6501_v38 = vld [vmem:[#allocation2 + $0x30] sm:$0xf]  ;;  %v2431_v47 = vrot.slane %v2430_v35, 4  ;;  %v2798_v62 = vrot.slane %v6463_v56, 5  ;;  %v2469_v2 = vshll.u32 %v6496_v8, 16  ;;  %v2435_v3 = vrot.slane %v2433_v36, 5 }
 0x220   : > { %v2365_v43 = vld [vmem:[#allocation2 + $0x34] sm:$0x1]  ;;  %v2452_v44 = vshrl.u32 %v6501_v38, 16  ;;  %v2455_v45 = vshll.u32 %v6501_v38, 16  ;;  %v2422_v46 = vsel %vm6062_vm2, %v2417_v34, %v2421_v31  ;;  %v2444_v53 = vor.u32 %v2443_v40, %v2440_v33  ;;  %v2767_v22 = vld [vmem:[#allocation2 + $0x30] sm:$0xe] }
 0x221   : > { %v4728_v50 = vcombine.low %v2408_v12, %v2422_v46  ;;  %v2461_v63 = vshll.u32 %v2365_v43, 16  ;;  %v2468_v0 = vrot.slane %v2466_v48, 4  ;;  %v2449_v6 = vrot.slane %v2447_v41, 5  ;;  %v5845_v31 = vld [vmem:[%s6986_s3 + $0x18] sm:$0xff]   ;;  %v2761_v48 = vld [vmem:[#allocation2] sm:$0xe] }
 0x222   : > { %v2454_v58 = vrot.slane %v2452_v44, 4  ;;  %v2457_v60 = vrot.slane %v2455_v45, 5  ;;  %v2445_v4 = vrot.slane %v2444_v53, 4  ;;  %v2802_v27 = vrot.slane %v6473_v1, 5  ;;  %v5849_v46 = vld [vmem:[%s6986_s3 + $0x38] sm:$0xff]   ;;  %v5853_v53 = vld [vmem:[%s6986_s3 + $0x88] sm:$0xff]  }
 0x223   : > { %5368 = vmatmul.mubr.bf16.vlgmr.msra.gmra.mrb[0].mxu1 %v4728_v50  ;;  %v2471_v9 = vrot.slane %v2469_v2, 5  ;;  %v2475_v10 = vshll.u32 %v2366_v57, 16  ;;  %v2436_v13 = vsel %vm6062_vm2, %v2431_v47, %v2435_v3  ;;  %v2463_v18 = vrot.slane %v2461_v63, 5  ;;  %v5851_v47 = vld [vmem:[%s6986_s3 + $0x80] sm:$0xff]   ;;  %v5860_v2 = vld [vmem:[%s6986_s3 + $0xb8] sm:$0xff]  }
 0x224   : > { %v2458_v21 = vor.u32 %v2457_v60, %v2454_v58  ;;  %5376 = vmatpush3.bf16.msra.mxu1 %v6381_v51  ;;  %v2450_v56 = vsel %vm6062_vm2, %v2445_v4, %v2449_v6  ;;  %v4753_v51 = vrot.slane %v2763_v49, 9  ;;  %v4754_v20 = vrot.slane %v2764_v61, 9  ;;  %v2762_v49 = vld [vmem:[#allocation2 + $0x8] sm:$0xe]  ;;  %v5857_v63 = vld [vmem:[%s6986_s3 + $0xa0] sm:$0xff]  }
 0x225   : > { %5377 = vmatprep.subr.bf16.mxu1 %v5842_v39  ;;  %v4729_v17 = vcombine.low %v2436_v13, %v2450_v56  ;;  %v2472_v19 = vor.u32 %v2471_v9, %v2468_v0  ;;  %v2477_v29 = vrot.slane %v2475_v10, 5  ;;  %v4757_v11 = vrot.slane %v2767_v22, 9  ;;  %v2766_v0 = vld [vmem:[#allocation2 + $0x28] sm:$0xe]  ;;  %v2765_v3 = vld [vmem:[#allocation2 + $0x20] sm:$0xe] }
 0x226   : > { %v2459_v15 = vrot.slane %v2458_v21, 4  ;;  %v6531_v52 = vsel %vm6525_vm11, %v4753_v51, %v2798_v62  ;;  %v6537_v30 = vsel %vm6525_vm11, %v4754_v20, %v2802_v27  ;;  %v2814_v12 = vrot.slane %v2365_v43, 5  ;;  %v5846_v43 = vld [vmem:[%s6986_s3 + $0x20] sm:$0xff]   ;;  %v3142_v20 = vld [vmem:[#allocation2 + $0x8] sm:$0xf] }
 0x227   : > { %5371 = vmatprep.mubr.bf16.mxu1 %v4729_v17  ;;  %v2473_v26 = vrot.slane %v2472_v19, 4  ;;  %v4760_v33 = vcombine.low %v6531_v52, %v6537_v30  ;;  %v4758_v35 = vrot.slane %v2768_v24, 9  ;;  %v2818_v36 = vrot.slane %v2366_v57, 5  ;;  %v5861_v21 = vld [vmem:[%s6986_s3 + $0xc0] sm:$0xff]   ;;  %v5867_v17 = vld [vmem:[%s6986_s3 + $0xe8] sm:$0xff]   ;;  %v5868_v19 = vld [vmem:[%s6986_s3 + $0xf0] sm:$0xff]  }
 0x228   : > { %5378 = vmatpush3.bf16.msra.mxu1 %v5842_v39  ;;  %v2464_v25 = vsel %vm6062_vm2, %v2459_v15, %v2463_v18  ;;  %v6548_v40 = vsel %vm6525_vm11, %v4757_v11, %v2814_v12  ;;  %v4739_v41 = vcombine.low %v6389_v54, %v6442_v32  ;;  %v5847_v54 = vld [vmem:[%s6986_s3 + $0x28] sm:$0xff]   ;;  %v5848_v32 = vld [vmem:[%s6986_s3 + $0x30] sm:$0xff]   ;;  %v4740_v50 = vcombine.low %v6456_v42, %v6461_v55  ;;  %v5866_v51 = vld [vmem:[%s6986_s3 + $0xe0] sm:$0xff]  }
 0x229   : > { %5379 = vmatprep.subr.bf16.mxu1 %v5843_v14  ;;  %v2478_v34 = vsel %vm6062_vm2, %v2473_v26, %v2477_v29  ;;  %v6554_v44 = vsel %vm6525_vm11, %v4758_v35, %v2818_v36  ;;  %v4741_v57 = vcombine.low %v6477_v7, %v6484_v16  ;;  %v2790_v58 = vrot.slane %v6397_v5, 5  ;;  %v5855_v42 = vld [vmem:[%s6986_s3 + $0x90] sm:$0xff]   ;;  %v5869_v24 = vld [vmem:[%s6986_s3 + $0xf8] sm:$0xff]   ;;  %v6647_v35 = vld [vmem:[#allocation2 + $0xc] sm:$0x1] }
 0x22a   : > { %v4730_v39 = vcombine.low %v2464_v25, %v2478_v34  ;;  %v4762_v45 = vcombine.low %v6548_v40, %v6554_v44  ;;  %v2794_v60 = vrot.slane %v6452_v37, 5  ;;  %v4751_v61 = vrot.slane %v2761_v48, 9  ;;  %v5856_v37 = vld [vmem:[%s6986_s3 + $0x98] sm:$0xff]   ;;  %v5864_v15 = vld [vmem:[#allocation2 + $0x8] ss:$8 sps:$4 sm:$0xff]  }
 0x22b   : > { %v4752_v62 = vrot.slane %v2762_v49, 9  ;;  %v4742_v5 = vcombine.low %v6501_v38, %v6496_v8  ;;  %v5858_v8 = vld [vmem:[%s6986_s3 + $0xa8] sm:$0xff]   ;;  %v5859_v38 = vld [vmem:[%s6986_s3 + $0xb0] sm:$0xff]   ;;  %v4756_v4 = vrot.slane %v2766_v0, 9  ;;  %v2810_v6 = vrot.slane %v6493_v28, 5 }
 0x22c   : > { %5380 = vmatpush3.bf16.msra.mxu1 %v5843_v14  ;;  %v2791_v55 = vsel %vm6525_vm11, %v4751_v61, %v2790_v58  ;;  %v4755_v27 = vrot.slane %v2765_v3, 9  ;;  %v2806_v9 = vrot.slane %v6490_v23, 5  ;;  %v5862_v28 = vld [vmem:[%s6986_s3 + $0xc8] sm:$0xff]   ;;  %v5863_v23 = vld [vmem:[%s6986_s3 + $0xd0] sm:$0xff]   ;;  %v5865_v14 = vld [vmem:[%s6986_s3 + $0xd8] sm:$0xff]   ;;  %v3159_v25 = vshrl.u32 %v3142_v20, 16 }
 0x22d   : > { %5372 = vmatmul.mubr.bf16.gmra.mrb[4].mxu1 %v4730_v39  ;;  %5381 = vmatprep.subr.bf16.mxu1 %v5845_v31  ;;  %v2795_v7 = vsel %vm6525_vm11, %v4752_v62, %v2794_v60  ;;  %v2811_v10 = vsel %vm6525_vm11, %v4756_v4, %v2810_v6  ;;  %v3144_v18 = vld [vmem:[#allocation2 + $0x10] sm:$0xf]  ;;  %v3162_v26 = vshll.u32 %v3142_v20, 16  ;;  %v6645_v12 = vld [vmem:[#allocation2 + $0x14] sm:$0x1]  ;;  %v5873_v39 = vld [vmem:[%s6986_s3 + $0x108] sm:$0xff]  }
 0x22e   : > { %5391 = vmatprep.mubr.bf16.mxu1 %v4739_v41  ;;  %v4759_v16 = vcombine.low %v2791_v55, %v2795_v7  ;;  %v2807_v13 = vsel %vm6525_vm11, %v4755_v27, %v2806_v9  ;;  %v3173_v22 = vshrl.u32 %v3144_v18, 16  ;;  %v3176_v52 = vshll.u32 %v3144_v18, 16  ;;  %v5870_v36 = vld [vmem:[#allocation2 + $0x18] ss:$8 sps:$4 sm:$0xff]   ;;  %v5872_v44 = vld [vmem:[#allocation2 + $0x28] ss:$8 sps:$4 sm:$0xff]  }
 0x22f   : > { %v4761_v56 = vcombine.low %v2807_v13, %v2811_v10  ;;  %v3164_v11 = vrot.slane %v3162_v26, 5  ;;  %v3182_v41 = vshll.u32 %v6645_v12, 16  ;;  %v5876_v58 = vld [vmem:[%s6986_s3 + $0x118] sm:$0xff]   ;;  %v3148_v61 = vld [vmem:[#allocation2 + $0x20] sm:$0xf]  ;;  %v5878_v3 = vld [vmem:[%s6986_s3 + $0x128] sm:$0xff]  }
 0x230   : > { %5382 = vmatpush3.bf16.msra.mxu1 %v5845_v31  ;;  %v3175_v29 = vrot.slane %v3173_v22, 4  ;;  %v3178_v30 = vrot.slane %v3176_v52, 5  ;;  %v5871_v31 = vld [vmem:[%s6986_s3 + $0x100] sm:$0xff]   ;;  %v3152_v62 = vld [vmem:[#allocation2 + $0x30] sm:$0xf] }
 0x231   : > { %5383 = vmatprep.subr.bf16.mxu1 %v5846_v43  ;;  %v5877_v55 = vld [vmem:[%s6986_s3 + $0x120] sm:$0xff]   ;;  %v3146_v7 = vld [vmem:[#allocation2 + $0x18] sm:$0xf]  ;;  %v6708_v20 = vld [vmem:[#allocation2 + $0x34] sm:$0x1] }
 0x232   : > { %v3179_v34 = vor.u32 %v3178_v30, %v3175_v29  ;;  %v3190_v0 = vshll.u32 %v3146_v7, 16  ;;  %v3156_v13 = vld [vmem:[#allocation2 + $0x40] sm:$0xf]  ;;  %v4313_v1 = vld [vmem:[%s5997_s12 + $0xcc] sm:$0xf] }
 0x233   : > { %v3257_v22 = vshrl.u32 %v3156_v13, 16  ;;  %v3260_v52 = vshll.u32 %v3156_v13, 16  ;;  %v3423_v13 = vld [vmem:[#allocation2 + $0x8] sm:$0xe] }
 0x234   : > { %5384 = vmatpush3.bf16.msra.mxu1 %v5846_v43  ;;  %v3168_v43 = vshll.u32 %v6647_v35, 16 }
 0x235   : > { %5385 = vmatprep.subr.bf16.mxu1 %v5847_v54 }
 0x236   : > { %v3170_v48 = vrot.slane %v3168_v43, 5  ;;  %v3262_v43 = vrot.slane %v3260_v52, 5  ;;  %v4795_v52 = vrot.slane %v3423_v13, 9  ;;  %v5891_v13 = vld [vmem:[%s6986_s3 + $0x190] sm:$0xff]  }
 0x238   : > { %5386 = vmatpush3.bf16.msra.mxu1 %v5847_v54  ;;  %v6657_v54 = vld [vmem:[%s6988_s5] sm:$0xff]  }
 0x239   : > { %5387 = vmatprep.subr.bf16.mxu1 %v5848_v32  ;;  %5567 = vmatprep.subr.bf16.mxu0 %v6657_v54 }
 0x23a   : > { %5568 = vmatpush3.bf16.msra.mxu0 %v6657_v54 }
 0x23c   : > { %5388 = vmatpush3.bf16.msra.mxu1 %v5848_v32  ;;  %v5875_v32 = vld [vmem:[%s6986_s3 + $0x110] sm:$0xff]  }
 0x23d   : > { %5389 = vmatprep.subr.bf16.mxu1 %v5849_v46 }
 0x240   : > { %5390 = vmatpush3.bf16.msra.mxu1 %v5849_v46 }
 0x241   : > { %5399 = vmatprep.subr.bf16.mxu1 %v5851_v47 }
 0x243   : > { %5392 = vmatmul.mubr.bf16.vlgmr.msra.gmra.mrb[0].mxu1 %v4740_v50  ;;  %v6669_v50 = vld [vmem:[%s6988_s5 + $0x8] sm:$0xff]  }
 0x244   : > { %5395 = vmatprep.mubr.bf16.mxu1 %v4741_v57  ;;  %5400 = vmatpush3.bf16.msra.mxu1 %v5851_v47  ;;  %v3184_v47 = vrot.slane %v3182_v41, 5 }
 0x245   : > { %5401 = vmatprep.subr.bf16.mxu1 %v5853_v53  ;;  %5569 = vmatprep.subr.bf16.mxu0 %v6669_v50 }
 0x246   : > { %5570 = vmatpush3.bf16.msra.mxu0 %v6669_v50 }
 0x248   : > { %5402 = vmatpush3.bf16.msra.mxu1 %v5853_v53  ;;  %v5874_v53 = vld [vmem:[#allocation2 + $0x38] ss:$8 sps:$4 sm:$0xff]  }
 0x249   : > { %5403 = vmatprep.subr.bf16.mxu1 %v5855_v42 }
 0x24b   : > { %5396 = vmatmul.mubr.bf16.gmra.mrb[4].mxu1 %v4742_v5  ;;  %v3201_v5 = vshrl.u32 %v3148_v61, 16 }
 0x24c   : > { %5404 = vmatpush3.bf16.msra.mxu1 %v5855_v42  ;;  %5415 = vmatprep.mubr.bf16.mxu1 %v4759_v16  ;;  %v6681_v42 = vld [vmem:[%s6988_s5 + $0x10] sm:$0xff]   ;;  %v3150_v16 = vld [vmem:[#allocation2 + $0x28] sm:$0xf] }
 0x24d   : > { %5405 = vmatprep.subr.bf16.mxu1 %v5856_v37  ;;  %5571 = vmatprep.subr.bf16.mxu0 %v6681_v42  ;;  %v3215_v4 = vshrl.u32 %v3150_v16, 16  ;;  %v3218_v6 = vshll.u32 %v3150_v16, 16  ;;  %v6745_v16 = vld [vmem:[#allocation2 + $0x3c] sm:$0x1] }
 0x24e   : > { %5572 = vmatpush3.bf16.msra.mxu0 %v6681_v42 }
 0x24f   : > { %v3220_v18 = vrot.slane %v3218_v6, 5 }
 0x250   : > { %5406 = vmatpush3.bf16.msra.mxu1 %v5856_v37  ;;  %v3204_v37 = vshll.u32 %v3148_v61, 16 }
 0x251   : > { %5407 = vmatprep.subr.bf16.mxu1 %v5857_v63 }
 0x252   : > { %v3206_v27 = vrot.slane %v3204_v37, 5 }
 0x254   : > { %5408 = vmatpush3.bf16.msra.mxu1 %v5857_v63  ;;  %v3229_v63 = vshrl.u32 %v3152_v62, 16 }
 0x255   : > { %5409 = vmatprep.subr.bf16.mxu1 %v5858_v8 }
 0x256   : > { %v3231_v9 = vrot.slane %v3229_v63, 4 }
 0x258   : > { %5410 = vmatpush3.bf16.msra.mxu1 %v5858_v8  ;;  %v3232_v8 = vshll.u32 %v3152_v62, 16 }
 0x259   : > { %5411 = vmatprep.subr.bf16.mxu1 %v5859_v38 }
 0x25a   : > { %v3234_v10 = vrot.slane %v3232_v8, 5 }
 0x25c   : > { %5412 = vmatpush3.bf16.msra.mxu1 %v5859_v38  ;;  %v3187_v38 = vshrl.u32 %v3146_v7, 16 }
 0x25d   : > { %5413 = vmatprep.subr.bf16.mxu1 %v5860_v2 }
 0x260   : > { %5414 = vmatpush3.bf16.msra.mxu1 %v5860_v2  ;;  %v6691_v2 = vld [vmem:[%s6988_s5 + $0x18] sm:$0xff]  }
 0x261   : > { %5423 = vmatprep.subr.bf16.mxu1 %v5861_v21  ;;  %5573 = vmatprep.subr.bf16.mxu0 %v6691_v2 }
 0x262   : > { %5574 = vmatpush3.bf16.msra.mxu0 %v6691_v2 }
 0x263   : > { %5416 = vmatmul.mubr.bf16.vlgmr.msra.gmra.mrb[0].mxu1 %v4760_v33  ;;  %v3161_v33 = vrot.slane %v3159_v25, 4  ;;  %v3235_v25 = vor.u32 %v3234_v10, %v3231_v9  ;;  %v3252_v9 = vshll.u32 %v6745_v16, 16 }
 0x264   : > { %5419 = vmatprep.mubr.bf16.mxu1 %v4761_v56  ;;  %5424 = vmatpush3.bf16.msra.mxu1 %v5861_v21  ;;  %v3203_v21 = vrot.slane %v3201_v5, 4  ;;  %v3192_v56 = vrot.slane %v3190_v0, 5  ;;  %v3424_v0 = vld [vmem:[#allocation2 + $0x10] sm:$0xe] }
 0x265   : > { %5425 = vmatprep.subr.bf16.mxu1 %v5862_v28  ;;  %v3165_v40 = vor.u32 %v3164_v11, %v3161_v33  ;;  %v6715_v33 = vld [vmem:[#allocation2 + $0x2c] sm:$0x1] }
 0x266   : > { %v6720_v11 = vld [vmem:[%s6988_s5 + $0x28] sm:$0xff]  }
 0x267   : > { %v3166_v46 = vrot.slane %v3165_v40, 4 }
 0x268   : > { %5426 = vmatpush3.bf16.msra.mxu1 %v5862_v28  ;;  %v3189_v28 = vrot.slane %v3187_v38, 4 }
 0x269   : > { %5427 = vmatprep.subr.bf16.mxu1 %v5863_v23  ;;  %v3171_v57 = vsel %vm6062_vm2, %v3166_v46, %v3170_v48 }
 0x26a   : > { %v3193_v30 = vor.u32 %v3192_v56, %v3189_v28 }
 0x26b   : > { %5420 = vmatmul.mubr.bf16.gmra.mrb[4].mxu1 %v4762_v45  ;;  %v3180_v45 = vrot.slane %v3179_v34, 4  ;;  %v5880_v34 = vld [vmem:[%s6986_s3 + $0x138] sm:$0xff]  }
 0x26c   : > { %5428 = vmatpush3.bf16.msra.mxu1 %v5863_v23  ;;  %5439 = vmatprep.mubr.bf16.mxu1 %v5864_v15  ;;  %v3154_v23 = vld [vmem:[#allocation2 + $0x38] sm:$0xf]  ;;  %v5879_v15 = vld [vmem:[%s6986_s3 + $0x130] sm:$0xff]   ;;  %v3194_v48 = vrot.slane %v3193_v30, 4  ;;  %v3254_v30 = vrot.slane %v3252_v9, 5 }
 0x26d   : > { %5429 = vmatprep.subr.bf16.mxu1 %v5865_v14  ;;  %v3185_v49 = vsel %vm6062_vm2, %v3180_v45, %v3184_v47  ;;  %v3243_v26 = vshrl.u32 %v3154_v23, 16  ;;  %v3246_v29 = vshll.u32 %v3154_v23, 16  ;;  %v3224_v45 = vshll.u32 %v6715_v33, 16 }
 0x26e   : > { %v4783_v60 = vcombine.low %v3171_v57, %v3185_v49  ;;  %v6735_v57 = vld [vmem:[%s6988_s5 + $0x30] sm:$0xff]   ;;  %v4796_v23 = vrot.slane %v3424_v0, 9 }
 0x26f   : > { %v3245_v46 = vrot.slane %v3243_v26, 4  ;;  %v3248_v47 = vrot.slane %v3246_v29, 5  ;;  %v3226_v5 = vrot.slane %v3224_v45, 5  ;;  %v4310_v29 = vld [vmem:[%s5997_s12 + $0x6c] sm:$0xf]  ;;  %v5887_v45 = vld [vmem:[%s6986_s3 + $0x170] sm:$0xff]  }
 0x270   : > { %5430 = vmatpush3.bf16.msra.mxu1 %v5865_v14  ;;  %v6701_v14 = vld [vmem:[%s6988_s5 + $0x20] sm:$0xff]  }
 0x271   : > { %5431 = vmatprep.subr.bf16.mxu1 %v5866_v51  ;;  %5575 = vmatprep.subr.bf16.mxu0 %v6701_v14  ;;  %v3249_v63 = vor.u32 %v3248_v47, %v3245_v46  ;;  %v3428_v46 = vld [vmem:[#allocation2 + $0x30] sm:$0xe]  ;;  %v5888_v47 = vld [vmem:[%s6986_s3 + $0x178] sm:$0xff]  }
 0x272   : > { %5576 = vmatpush3.bf16.msra.mxu0 %v6701_v14 }
 0x273   : > { %5577 = vmatprep.subr.bf16.mxu0 %v6720_v11  ;;  %v3250_v28 = vrot.slane %v3249_v63, 4  ;;  %v3465_v63 = vrot.slane %v6715_v33, 5  ;;  %v5890_v33 = vld [vmem:[%s6986_s3 + $0x188] sm:$0xff]  }
 0x274   : > { %5432 = vmatpush3.bf16.msra.mxu1 %v5866_v51  ;;  %v6706_v51 = vld [vmem:[#allocation2 + $0x24] sm:$0x1] }
 0x275   : > { %5433 = vmatprep.subr.bf16.mxu1 %v5867_v17 }
 0x276   : > { %5578 = vmatpush3.bf16.msra.mxu0 %v6720_v11 }
 0x277   : > { %5579 = vmatprep.subr.bf16.mxu0 %v6735_v57 }
 0x278   : > { %5434 = vmatpush3.bf16.msra.mxu1 %v5867_v17  ;;  %v3217_v17 = vrot.slane %v3215_v4, 4 }
 0x279   : > { %5435 = vmatprep.subr.bf16.mxu1 %v5868_v19 }
 0x27a   : > { %5580 = vmatpush3.bf16.msra.mxu0 %v6735_v57 }
 0x27c   : > { %5436 = vmatpush3.bf16.msra.mxu1 %v5868_v19  ;;  %v3207_v19 = vor.u32 %v3206_v27, %v3203_v21  ;;  %v5882_v21 = vld [vmem:[%s6986_s3 + $0x148] sm:$0xff]  }
 0x27d   : > { %5437 = vmatprep.subr.bf16.mxu1 %v5869_v24 }
 0x27e   : > { %v3208_v41 = vrot.slane %v3207_v19, 4  ;;  %v4309_v19 = vld [vmem:[%s5997_s12 + $0x4c] sm:$0xf] }
 0x280   : > { %5438 = vmatpush3.bf16.msra.mxu1 %v5869_v24  ;;  %v6711_v24 = vld [vmem:[#allocation2 + $0x1c] sm:$0x1] }
 0x281   : > { %5447 = vmatprep.subr.bf16.mxu1 %v5871_v31  ;;  %v3196_v40 = vshll.u32 %v6711_v24, 16 }
 0x283   : > { %5440 = vmatmul.mubr.bf16.vlgmr.msra.gmra.mrb[0].mxu1 %v5870_v36  ;;  %v3221_v36 = vor.u32 %v3220_v18, %v3217_v17  ;;  %v3198_v62 = vrot.slane %v3196_v40, 5  ;;  %v4307_v17 = vld [vmem:[%s5997_s12 + $0xc] sm:$0xf]  ;;  %v5884_v40 = vld [vmem:[%s6986_s3 + $0x158] sm:$0xff]  }
 0x284   : > { %5443 = vmatprep.mubr.bf16.mxu1 %v5872_v44  ;;  %5448 = vmatpush3.bf16.msra.mxu1 %v5871_v31  ;;  %v3210_v31 = vshll.u32 %v6706_v51, 16  ;;  %v3259_v44 = vrot.slane %v3257_v22, 4  ;;  %v4308_v18 = vld [vmem:[%s5997_s12 + $0x2c] sm:$0xf]  ;;  %v5883_v22 = vld [vmem:[%s6986_s3 + $0x150] sm:$0xff]  }
 0x285   : > { %5449 = vmatprep.subr.bf16.mxu1 %v5873_v39  ;;  %v3199_v38 = vsel %vm6062_vm2, %v3194_v48, %v3198_v62  ;;  %v4860_v26 = vcombine.low %v4307_v17, %v4308_v18  ;;  %v3425_v48 = vld [vmem:[#allocation2 + $0x18] sm:$0xe]  ;;  %v3469_v62 = vrot.slane %v6708_v20, 5  ;;  %v5895_v17 = vld [vmem:[%s6986_s3 + $0x1a8] sm:$0xff]   ;;  %v3802_v18 = vld [vmem:[#allocation2 + $0x10] sm:$0xf] }
 0x286   : > { %v3212_v49 = vrot.slane %v3210_v31, 5  ;;  %v3263_v7 = vor.u32 %v3262_v43, %v3259_v44  ;;  %v4861_v31 = vcombine.low %v4309_v19, %v4310_v29  ;;  %v5885_v44 = vld [vmem:[%s6986_s3 + $0x160] sm:$0xff]   ;;  %v5886_v43 = vld [vmem:[%s6986_s3 + $0x168] sm:$0xff]   ;;  %v5896_v19 = vld [vmem:[%s6986_s3 + $0x1b0] sm:$0xff]  }
 0x287   : > { %5583 = vmatprep.mubr.bf16.mxu0 %v4860_v26  ;;  %v5897_v26 = vld [vmem:[%s6986_s3 + $0x1b8] sm:$0xff]  }
 0x288   : > { %5450 = vmatpush3.bf16.msra.mxu1 %v5873_v39  ;;  %v3238_v39 = vshll.u32 %v6708_v20, 16  ;;  %v3264_v10 = vrot.slane %v3263_v7, 4  ;;  %v3457_v7 = vrot.slane %v6711_v24, 5 }
 0x289   : > { %5451 = vmatprep.subr.bf16.mxu1 %v5875_v32 }
 0x28a   : > { %v3240_v61 = vrot.slane %v3238_v39, 5 }
 0x28b   : > { %5444 = vmatmul.mubr.bf16.gmra.mrb[4].mxu1 %v5874_v53  ;;  %v6730_v53 = vld [vmem:[#allocation2 + $0x44] sm:$0x1] }
 0x28c   : > { %5452 = vmatpush3.bf16.msra.mxu1 %v5875_v32  ;;  %5463 = vmatprep.mubr.bf16.mxu1 %v4783_v60  ;;  %v3236_v32 = vrot.slane %v3235_v25, 4  ;;  %v3222_v60 = vrot.slane %v3221_v36, 4  ;;  %v3266_v8 = vshll.u32 %v6730_v53, 16  ;;  %v3449_v25 = vrot.slane %v6647_v35, 5 }
 0x28d   : > { %5453 = vmatprep.subr.bf16.mxu1 %v5876_v58  ;;  %v3255_v36 = vsel %vm6062_vm2, %v3250_v28, %v3254_v30 }
 0x28e   : > { %v3241_v37 = vsel %vm6062_vm2, %v3236_v32, %v3240_v61  ;;  %v3227_v6 = vsel %vm6062_vm2, %v3222_v60, %v3226_v5  ;;  %v3268_v56 = vrot.slane %v3266_v8, 5  ;;  %v3450_v35 = vsel %vm6525_vm11, %v4795_v52, %v3449_v25  ;;  %v3426_v32 = vld [vmem:[#allocation2 + $0x20] sm:$0xe]  ;;  %v3427_v60 = vld [vmem:[#allocation2 + $0x28] sm:$0xe] }
 0x28f   : > { %v4785_v27 = vcombine.low %v3227_v6, %v3241_v37  ;;  %v4800_v61 = vrot.slane %v3428_v46, 9  ;;  %v5889_v5 = vld [vmem:[%s6986_s3 + $0x180] sm:$0xff]   ;;  %v4799_v37 = vrot.slane %v3427_v60, 9  ;;  %v3819_v52 = vshrl.u32 %v3802_v18, 16  ;;  %v5900_v46 = vld [vmem:[#allocation2 + $0x30] ss:$8 sps:$4 sm:$0xff]  }
 0x290   : > { %5454 = vmatpush3.bf16.msra.mxu1 %v5876_v58  ;;  %v5881_v58 = vld [vmem:[%s6986_s3 + $0x140] sm:$0xff]   ;;  %v3822_v25 = vshll.u32 %v3802_v18, 16 }
 0x291   : > { %5455 = vmatprep.subr.bf16.mxu1 %v5877_v55  ;;  %v3466_v0 = vsel %vm6525_vm11, %v4799_v37, %v3465_v63  ;;  %v3808_v63 = vld [vmem:[#allocation2 + $0x28] sm:$0xf] }
 0x294   : > { %5456 = vmatpush3.bf16.msra.mxu1 %v5877_v55  ;;  %v3213_v55 = vsel %vm6062_vm2, %v3208_v41, %v3212_v49  ;;  %v4798_v49 = vrot.slane %v3426_v32, 9 }
 0x295   : > { %5457 = vmatprep.subr.bf16.mxu1 %v5878_v3  ;;  %v4784_v4 = vcombine.low %v3199_v38, %v3213_v55  ;;  %v4797_v55 = vrot.slane %v3425_v48, 9  ;;  %v3430_v38 = vld [vmem:[#allocation2 + $0x40] sm:$0xe] }
 0x297   : > { %v3458_v20 = vsel %vm6525_vm11, %v4797_v55, %v3457_v7  ;;  %v5902_v55 = vld [vmem:[#allocation2 + $0x40] ss:$8 sps:$4 sm:$0xff]  }
 0x298   : > { %5458 = vmatpush3.bf16.msra.mxu1 %v5878_v3  ;;  %v6754_v3 = vld [vmem:[%s6988_s5 + $0x38] sm:$0xff]  }
 0x299   : > { %5459 = vmatprep.subr.bf16.mxu1 %v5879_v15  ;;  %5581 = vmatprep.subr.bf16.mxu0 %v6754_v3 }
 0x29a   : > { %5582 = vmatpush3.bf16.msra.mxu0 %v6754_v3 }
 0x29c   : > { %5460 = vmatpush3.bf16.msra.mxu1 %v5879_v15  ;;  %v3453_v15 = vrot.slane %v6645_v12, 5  ;;  %v3269_v12 = vsel %vm6062_vm2, %v3264_v10, %v3268_v56  ;;  %v3473_v10 = vrot.slane %v6745_v16, 5  ;;  %v5894_v16 = vld [vmem:[%s6986_s3 + $0x1a0] sm:$0xff]  }
 0x29d   : > { %5461 = vmatprep.subr.bf16.mxu1 %v5880_v34  ;;  %5584 = vmatmul.mubr.bf16.vlgmr.msra.gmra.mrb[8].mxu0 %v4861_v31  ;;  %v4786_v39 = vcombine.low %v3255_v36, %v3269_v12  ;;  %v3821_v12 = vrot.slane %v3819_v52, 4  ;;  %v3824_v31 = vrot.slane %v3822_v25, 5 }
 0x2a0   : > { %5462 = vmatpush3.bf16.msra.mxu1 %v5880_v34  ;;  %v3454_v34 = vsel %vm6525_vm11, %v4796_v23, %v3453_v15  ;;  %v5892_v15 = vld [vmem:[#allocation2 + $0x10] ss:$8 sps:$4 sm:$0xff]  }
 0x2a1   : > { %5471 = vmatprep.subr.bf16.mxu1 %v5881_v58  ;;  %v4803_v41 = vcombine.low %v3450_v35, %v3454_v34  ;;  %v5899_v34 = vld [vmem:[%s6986_s3 + $0x1c0] sm:$0xff]   ;;  %v6841_v35 = vld [vmem:[#allocation2 + $0x14] sm:$0x1] }
 0x2a3   : > { %5464 = vmatmul.mubr.bf16.vlgmr.msra.gmra.mrb[0].mxu1 %v4784_v4  ;;  %v3429_v4 = vld [vmem:[#allocation2 + $0x38] sm:$0xe] }
 0x2a4   : > { %5467 = vmatprep.mubr.bf16.mxu1 %v4785_v27  ;;  %5472 = vmatpush3.bf16.msra.mxu1 %v5881_v58  ;;  %v3461_v58 = vrot.slane %v6706_v51, 5  ;;  %v3470_v51 = vsel %vm6525_vm11, %v4800_v61, %v3469_v62  ;;  %v3477_v27 = vrot.slane %v6730_v53, 5  ;;  %v4801_v9 = vrot.slane %v3429_v4, 9  ;;  %v5893_v53 = vld [vmem:[%s6986_s3 + $0x198] sm:$0xff]  }
 0x2a5   : > { %5473 = vmatprep.subr.bf16.mxu1 %v5882_v21  ;;  %v4805_v6 = vcombine.low %v3466_v0, %v3470_v51  ;;  %v5905_v51 = vld [vmem:[%s6986_s3 + $0x1e0] sm:$0xff]   ;;  %v3812_v0 = vld [vmem:[#allocation2 + $0x38] sm:$0xf] }
 0x2a6   : > { %v3462_v8 = vsel %vm6525_vm11, %v4798_v49, %v3461_v58  ;;  %v3474_v56 = vsel %vm6525_vm11, %v4801_v9, %v3473_v10  ;;  %v5903_v49 = vld [vmem:[%s6986_s3 + $0x1d0] sm:$0xff]   ;;  %v3889_v9 = vshrl.u32 %v3812_v0, 16  ;;  %v3892_v10 = vshll.u32 %v3812_v0, 16 }
 0x2a7   : > { %v4804_v24 = vcombine.low %v3458_v20, %v3462_v8  ;;  %v3810_v8 = vld [vmem:[#allocation2 + $0x30] sm:$0xf]  ;;  %v3861_v20 = vshrl.u32 %v3808_v63, 16 }
 0x2a8   : > { %5474 = vmatpush3.bf16.msra.mxu1 %v5882_v21  ;;  %v4802_v21 = vrot.slane %v3430_v38, 9  ;;  %v3806_v38 = vld [vmem:[#allocation2 + $0x20] sm:$0xf]  ;;  %v3878_v4 = vshll.u32 %v3810_v8, 16  ;;  %v3891_v52 = vrot.slane %v3889_v9, 4  ;;  %v3894_v25 = vrot.slane %v3892_v10, 5 }
 0x2a9   : > { %5475 = vmatprep.subr.bf16.mxu1 %v5883_v22  ;;  %v4083_v9 = vld [vmem:[#allocation2 + $0x10] sm:$0xe] }
 0x2aa   : > { %v3478_v28 = vsel %vm6525_vm11, %v4802_v21, %v3477_v27  ;;  %v3850_v21 = vshll.u32 %v3806_v38, 16  ;;  %v5906_v27 = vld [vmem:[%s6986_s3 + $0x1e8] sm:$0xff]  }
 0x2ab   : > { %5468 = vmatmul.mubr.bf16.gmra.mrb[4].mxu1 %v4786_v39  ;;  %v4806_v23 = vcombine.low %v3474_v56, %v3478_v28  ;;  %v3863_v28 = vrot.slane %v3861_v20, 4 }
 0x2ac   : > { %5476 = vmatpush3.bf16.msra.mxu1 %v5883_v22  ;;  %5487 = vmatprep.mubr.bf16.mxu1 %v4803_v41  ;;  %v3804_v22 = vld [vmem:[#allocation2 + $0x18] sm:$0xf]  ;;  %v6843_v41 = vld [vmem:[#allocation2 + $0x1c] sm:$0x1] }
 0x2ad   : > { %5477 = vmatprep.subr.bf16.mxu1 %v5884_v40  ;;  %v3833_v29 = vshrl.u32 %v3804_v22, 16  ;;  %v3836_v30 = vshll.u32 %v3804_v22, 16  ;;  %v3842_v48 = vshll.u32 %v6843_v41, 16  ;;  %v6869_v22 = vld [vmem:[#allocation2 + $0x2c] sm:$0x1] }
 0x2af   : > { %v3835_v36 = vrot.slane %v3833_v29, 4  ;;  %v3838_v39 = vrot.slane %v3836_v30, 5  ;;  %v3844_v62 = vrot.slane %v3842_v48, 5  ;;  %v6871_v30 = vld [vmem:[#allocation2 + $0x34] sm:$0x1] }
 0x2b0   : > { %5478 = vmatpush3.bf16.msra.mxu1 %v5884_v40  ;;  %v3825_v40 = vor.u32 %v3824_v31, %v3821_v12 }
 0x2b1   : > { %5479 = vmatprep.subr.bf16.mxu1 %v5885_v44  ;;  %v3839_v32 = vor.u32 %v3838_v39, %v3835_v36 }
 0x2b3   : > { %v3840_v60 = vrot.slane %v3839_v32, 4  ;;  %v3895_v32 = vor.u32 %v3894_v25, %v3891_v52  ;;  %v5913_v52 = vld [vmem:[%s6986_s3 + $0x210] sm:$0xff]  }
 0x2b4   : > { %5480 = vmatpush3.bf16.msra.mxu1 %v5885_v44  ;;  %v5898_v44 = vld [vmem:[#allocation2 + $0x20] ss:$8 sps:$4 sm:$0xff]  }
 0x2b5   : > { %5481 = vmatprep.subr.bf16.mxu1 %v5886_v43  ;;  %v3845_v7 = vsel %vm6062_vm2, %v3840_v60, %v3844_v62 }
 0x2b8   : > { %5482 = vmatpush3.bf16.msra.mxu1 %v5886_v43  ;;  %v5901_v43 = vld [vmem:[%s6986_s3 + $0x1c8] sm:$0xff]  }
 0x2b9   : > { %5483 = vmatprep.subr.bf16.mxu1 %v5887_v45 }
 0x2bc   : > { %5484 = vmatpush3.bf16.msra.mxu1 %v5887_v45  ;;  %v3828_v45 = vshll.u32 %v6841_v35, 16 }
 0x2bd   : > { %5485 = vmatprep.subr.bf16.mxu1 %v5888_v47 }
 0x2be   : > { %v3830_v58 = vrot.slane %v3828_v45, 5  ;;  %v3884_v45 = vshll.u32 %v6871_v30, 16 }
 0x2c0   : > { %5486 = vmatpush3.bf16.msra.mxu1 %v5888_v47  ;;  %v3826_v47 = vrot.slane %v3825_v40, 4  ;;  %v3870_v40 = vshll.u32 %v6869_v22, 16 }
 0x2c1   : > { %5495 = vmatprep.subr.bf16.mxu1 %v5889_v5 }
 0x2c2   : > { %v3831_v61 = vsel %vm6062_vm2, %v3826_v47, %v3830_v58 }
 0x2c3   : > { %5488 = vmatmul.mubr.bf16.vlgmr.msra.gmra.mrb[0].mxu1 %v4804_v24  ;;  %v4827_v37 = vcombine.low %v3831_v61, %v3845_v7  ;;  %v3864_v24 = vshll.u32 %v3808_v63, 16  ;;  %v3872_v7 = vrot.slane %v3870_v40, 5  ;;  %v3886_v63 = vrot.slane %v3884_v45, 5  ;;  %v5919_v40 = vld [vmem:[%s6986_s3 + $0x228] sm:$0xff]  }
 0x2c4   : > { %5491 = vmatprep.mubr.bf16.mxu1 %v4805_v6  ;;  %5496 = vmatpush3.bf16.msra.mxu1 %v5889_v5  ;;  %v5904_v5 = vld [vmem:[%s6986_s3 + $0x1d8] sm:$0xff]   ;;  %v3847_v6 = vshrl.u32 %v3806_v38, 16  ;;  %v4086_v45 = vld [vmem:[#allocation2 + $0x28] sm:$0xe] }
 0x2c5   : > { %5497 = vmatprep.subr.bf16.mxu1 %v5890_v33  ;;  %v3866_v56 = vrot.slane %v3864_v24, 5 }
 0x2c7   : > { %v3867_v29 = vor.u32 %v3866_v56, %v3863_v28  ;;  %v5911_v28 = vld [vmem:[%s6986_s3 + $0x208] sm:$0xff]  }
 0x2c8   : > { %5498 = vmatpush3.bf16.msra.mxu1 %v5890_v33  ;;  %v3875_v33 = vshrl.u32 %v3810_v8, 16  ;;  %v3896_v8 = vrot.slane %v3895_v32, 4  ;;  %v4087_v32 = vld [vmem:[#allocation2 + $0x30] sm:$0xe] }
 0x2c9   : > { %5499 = vmatprep.subr.bf16.mxu1 %v5891_v13 }
 0x2cb   : > { %5492 = vmatmul.mubr.bf16.gmra.mrb[4].mxu1 %v4806_v23  ;;  %v3877_v23 = vrot.slane %v3875_v33, 4 }
 0x2cc   : > { %5500 = vmatpush3.bf16.msra.mxu1 %v5891_v13  ;;  %5511 = vmatprep.mubr.bf16.mxu1 %v5892_v15  ;;  %v3816_v13 = vld [vmem:[#allocation2 + $0x48] sm:$0xf]  ;;  %v3814_v15 = vld [vmem:[#allocation2 + $0x40] sm:$0xf] }
 0x2cd   : > { %5501 = vmatprep.subr.bf16.mxu1 %v5893_v53  ;;  %v3917_v18 = vshrl.u32 %v3816_v13, 16  ;;  %v3903_v12 = vshrl.u32 %v3814_v15, 16  ;;  %v3906_v31 = vshll.u32 %v3814_v15, 16 }
 0x2cf   : > { %v3905_v58 = vrot.slane %v3903_v12, 4  ;;  %v3908_v60 = vrot.slane %v3906_v31, 5 }
 0x2d0   : > { %5502 = vmatpush3.bf16.msra.mxu1 %v5893_v53  ;;  %v3880_v53 = vrot.slane %v3878_v4, 5 }
 0x2d1   : > { %5503 = vmatprep.subr.bf16.mxu1 %v5894_v16  ;;  %v3909_v0 = vor.u32 %v3908_v60, %v3905_v58  ;;  %v4088_v58 = vld [vmem:[#allocation2 + $0x38] sm:$0xe]  ;;  %v4843_v60 = vrot.slane %v4087_v32, 9 }
 0x2d2   : > { %v3881_v36 = vor.u32 %v3880_v53, %v3877_v23 }
 0x2d3   : > { %v3910_v23 = vrot.slane %v3909_v0, 4 }
 0x2d4   : > { %5504 = vmatpush3.bf16.msra.mxu1 %v5894_v16  ;;  %v3849_v16 = vrot.slane %v3847_v6, 4  ;;  %v3882_v61 = vrot.slane %v3881_v36, 4 }
 0x2d5   : > { %5505 = vmatprep.subr.bf16.mxu1 %v5895_v17 }
 0x2d6   : > { %v3887_v4 = vsel %vm6062_vm2, %v3882_v61, %v3886_v63  ;;  %v4125_v61 = vrot.slane %v6871_v30, 5 }
 0x2d8   : > { %5506 = vmatpush3.bf16.msra.mxu1 %v5895_v17  ;;  %v3852_v17 = vrot.slane %v3850_v21, 5 }
 0x2d9   : > { %5507 = vmatprep.subr.bf16.mxu1 %v5896_v19 }
 0x2da   : > { %v3853_v39 = vor.u32 %v3852_v17, %v3849_v16  ;;  %v4084_v16 = vld [vmem:[#allocation2 + $0x18] sm:$0xe]  ;;  %v4839_v17 = vrot.slane %v4083_v9, 9 }
 0x2db   : > { %v4840_v25 = vrot.slane %v4084_v16, 9 }
 0x2dc   : > { %5508 = vmatpush3.bf16.msra.mxu1 %v5896_v19  ;;  %v5907_v19 = vld [vmem:[%s6986_s3 + $0x1f0] sm:$0xff]  }
 0x2dd   : > { %5509 = vmatprep.subr.bf16.mxu1 %v5897_v26 }
 0x2e0   : > { %5510 = vmatpush3.bf16.msra.mxu1 %v5897_v26  ;;  %v3920_v26 = vshll.u32 %v3816_v13, 16 }
 0x2e1   : > { %5519 = vmatprep.subr.bf16.mxu1 %v5899_v34 }
 0x2e2   : > { %v3922_v47 = vrot.slane %v3920_v26, 5  ;;  %v4113_v26 = vrot.slane %v6843_v41, 5 }
 0x2e3   : > { %5512 = vmatmul.mubr.bf16.vlgmr.msra.gmra.mrb[0].mxu1 %v5898_v44  ;;  %v6876_v44 = vld [vmem:[#allocation2 + $0x3c] sm:$0x1] }
 0x2e4   : > { %5515 = vmatprep.mubr.bf16.mxu1 %v5900_v46  ;;  %5520 = vmatpush3.bf16.msra.mxu1 %v5899_v34  ;;  %v6873_v34 = vld [vmem:[#allocation2 + $0x24] sm:$0x1]  ;;  %v3919_v46 = vrot.slane %v3917_v18, 4  ;;  %v3898_v62 = vshll.u32 %v6876_v44, 16  ;;  %v4109_v18 = vrot.slane %v6841_v35, 5  ;;  %v4114_v36 = vsel %vm6525_vm11, %v4840_v25, %v4113_v26 }
 0x2e5   : > { %5521 = vmatprep.subr.bf16.mxu1 %v5901_v43  ;;  %v3856_v48 = vshll.u32 %v6873_v34, 16 }
 0x2e6   : > { %v3923_v38 = vor.u32 %v3922_v47, %v3919_v46  ;;  %v3900_v6 = vrot.slane %v3898_v62, 5  ;;  %v4110_v35 = vsel %vm6525_vm11, %v4839_v17, %v4109_v18  ;;  %v5923_v46 = vld [vmem:[%s6986_s3 + $0x238] sm:$0xff]   ;;  %v4085_v47 = vld [vmem:[#allocation2 + $0x20] sm:$0xe] }
 0x2e7   : > { %v3858_v20 = vrot.slane %v3856_v48, 5  ;;  %v4847_v41 = vcombine.low %v4110_v35, %v4114_v36  ;;  %v4842_v48 = vrot.slane %v4086_v45, 9  ;;  %v4841_v62 = vrot.slane %v4085_v47, 9 }
 0x2e8   : > { %5522 = vmatpush3.bf16.msra.mxu1 %v5901_v43  ;;  %v5908_v43 = vld [vmem:[%s6986_s3 + $0x1f8] sm:$0xff]   ;;  %v3901_v13 = vsel %vm6062_vm2, %v3896_v8, %v3900_v6  ;;  %v3924_v53 = vrot.slane %v3923_v38, 4  ;;  %v4090_v8 = vld [vmem:[#allocation2 + $0x48] sm:$0xe]  ;;  %v4126_v38 = vsel %vm6525_vm11, %v4843_v60, %v4125_v61  ;;  %v4311_v6 = vld [vmem:[%s5997_s12 + $0x8c] sm:$0xf] }
 0x2e9   : > { %5523 = vmatprep.subr.bf16.mxu1 %v5903_v49  ;;  %v4829_v56 = vcombine.low %v3887_v4, %v3901_v13 }
 0x2eb   : > { %5516 = vmatmul.mubr.bf16.gmra.mrb[4].mxu1 %v5902_v55  ;;  %v3854_v55 = vrot.slane %v3853_v39, 4  ;;  %v5915_v39 = vld [vmem:[%s6986_s3 + $0x218] sm:$0xff]  }
 0x2ec   : > { %5524 = vmatpush3.bf16.msra.mxu1 %v5903_v49  ;;  %5535 = vmatprep.mubr.bf16.mxu1 %v4827_v37  ;;  %v3868_v49 = vrot.slane %v3867_v29, 4  ;;  %v5909_v37 = vld [vmem:[%s6986_s3 + $0x200] sm:$0xff]  }
 0x2ed   : > { %5525 = vmatprep.subr.bf16.mxu1 %v5904_v5  ;;  %v3859_v21 = vsel %vm6062_vm2, %v3854_v55, %v3858_v20  ;;  %v4117_v55 = vrot.slane %v6873_v34, 5 }
 0x2ee   : > { %v3873_v24 = vsel %vm6062_vm2, %v3868_v49, %v3872_v7  ;;  %v4121_v49 = vrot.slane %v6869_v22, 5  ;;  %v4844_v7 = vrot.slane %v4088_v58, 9  ;;  %v4089_v22 = vld [vmem:[#allocation2 + $0x40] sm:$0xe] }
 0x2ef   : > { %v4828_v10 = vcombine.low %v3859_v21, %v3873_v24  ;;  %v4118_v30 = vsel %vm6525_vm11, %v4841_v62, %v4117_v55  ;;  %v4845_v0 = vrot.slane %v4089_v22, 9  ;;  %v4312_v21 = vld [vmem:[%s5997_s12 + $0xac] sm:$0xf] }
 0x2f0   : > { %5526 = vmatpush3.bf16.msra.mxu1 %v5904_v5  ;;  %v6884_v5 = vld [vmem:[#allocation2 + $0x4c] sm:$0x1]  ;;  %v4122_v63 = vsel %vm6525_vm11, %v4842_v48, %v4121_v49 }
 0x2f1   : > { %5527 = vmatprep.subr.bf16.mxu1 %v5905_v51  ;;  %v3926_v33 = vshll.u32 %v6884_v5, 16  ;;  %v4848_v20 = vcombine.low %v4118_v30, %v4122_v63  ;;  %v4137_v4 = vrot.slane %v6884_v5, 5 }
 0x2f3   : > { %v3928_v15 = vrot.slane %v3926_v33, 5 }
 0x2f4   : > { %5528 = vmatpush3.bf16.msra.mxu1 %v5905_v51  ;;  %v6889_v51 = vld [vmem:[#allocation2 + $0x44] sm:$0x1] }
 0x2f5   : > { %5529 = vmatprep.subr.bf16.mxu1 %v5906_v27  ;;  %v3929_v12 = vsel %vm6062_vm2, %v3924_v53, %v3928_v15  ;;  %v4133_v33 = vrot.slane %v6889_v51, 5  ;;  %v4872_v53 = vld [vmem:[%s6989_s6] ss:$0 sm:$0xff] }
 0x2f8   : > { %5530 = vmatpush3.bf16.msra.mxu1 %v5906_v27  ;;  %v3912_v27 = vshll.u32 %v6889_v51, 16  ;;  %v4862_v51 = vcombine.low %v4311_v6, %v4312_v21 }
 0x2f9   : > { %5531 = vmatprep.subr.bf16.mxu1 %v5907_v19 }
 0x2fc   : > { %5532 = vmatpush3.bf16.msra.mxu1 %v5907_v19  ;;  %v3914_v19 = vrot.slane %v3912_v27, 5  ;;  %v4134_v27 = vsel %vm6525_vm11, %v4845_v0, %v4133_v33 }
 0x2fd   : > { %5533 = vmatprep.subr.bf16.mxu1 %v5908_v43 }
 0x2fe   : > { %v3915_v29 = vsel %vm6062_vm2, %v3910_v23, %v3914_v19 }
 0x2ff   : > { %v4830_v31 = vcombine.low %v3915_v29, %v3929_v12 }
 0x300   : > { %5534 = vmatpush3.bf16.msra.mxu1 %v5908_v43  ;;  %v5921_v43 = vld [vmem:[%s6986_s3 + $0x230] sm:$0xff]  }
 0x301   : > { %5543 = vmatprep.subr.bf16.mxu1 %v5909_v37 }
 0x303   : > { %5536 = vmatmul.mubr.bf16.vlgmr.msra.gmra.mrb[0].mxu1 %v4828_v10 }
 0x304   : > { %5539 = vmatprep.mubr.bf16.mxu1 %v4829_v56  ;;  %5544 = vmatpush3.bf16.msra.mxu1 %v5909_v37  ;;  %v4129_v37 = vrot.slane %v6876_v44, 5  ;;  %v4846_v44 = vrot.slane %v4090_v8, 9 }
 0x305   : > { %5545 = vmatprep.subr.bf16.mxu1 %v5911_v28 }
 0x306   : > { %v4130_v34 = vsel %vm6525_vm11, %v4844_v7, %v4129_v37  ;;  %v4138_v9 = vsel %vm6525_vm11, %v4846_v44, %v4137_v4 }
 0x307   : > { %v4849_v24 = vcombine.low %v4126_v38, %v4130_v34  ;;  %v4850_v5 = vcombine.low %v4134_v27, %v4138_v9 }
 0x308   : > { %5546 = vmatpush3.bf16.msra.mxu1 %v5911_v28 }
 0x309   : > { %5547 = vmatprep.subr.bf16.mxu1 %v5913_v52 }
 0x30b   : > { %5540 = vmatmul.mubr.bf16.gmra.mrb[4].mxu1 %v4830_v31 }
 0x30c   : > { %5548 = vmatpush3.bf16.msra.mxu1 %v5913_v52  ;;  %5559 = vmatprep.mubr.bf16.mxu1 %v4847_v41 }
 0x30d   : > { %5549 = vmatprep.subr.bf16.mxu1 %v5915_v39 }
 0x310   : > { %5550 = vmatpush3.bf16.msra.mxu1 %v5915_v39 }
 0x311   : > { %5551 = vmatprep.subr.bf16.mxu1 %v5917_v59 }
 0x314   : > { %5552 = vmatpush3.bf16.msra.mxu1 %v5917_v59 }
 0x315   : > { %5553 = vmatprep.subr.bf16.mxu1 %v5919_v40 }
 0x318   : > { %5554 = vmatpush3.bf16.msra.mxu1 %v5919_v40 }
 0x319   : > { %5555 = vmatprep.subr.bf16.mxu1 %v5921_v43 }
 0x31c   : > { %5556 = vmatpush3.bf16.msra.mxu1 %v5921_v43 }
 0x31d   : > { %5557 = vmatprep.subr.bf16.mxu1 %v5923_v46 }
 0x320   : > { %5558 = vmatpush3.bf16.msra.mxu1 %v5923_v46 }
 0x321   : > { %5591 = vmatprep.subr.bf16.mxu1 %v6657_v54 }
 0x323   : > { %5560 = vmatmul.mubr.bf16.vlgmr.msra.gmra.mrb[0].mxu1 %v4848_v20 }
 0x324   : > { %5563 = vmatprep.mubr.bf16.mxu1 %v4849_v24  ;;  %5599 = vmatpush3.bf16.msra.mxu1 %v6657_v54  ;;  %v4314_v54 = vld [vmem:[%s5997_s12 + $0xec] sm:$0xf] }
 0x325   : > { %5592 = vmatprep.subr.bf16.mxu1 %v6669_v50 }
 0x328   : > { %5600 = vmatpush3.bf16.msra.mxu1 %v6669_v50  ;;  %v4863_v50 = vcombine.low %v4313_v1, %v4314_v54 }
 0x329   : > { %5593 = vmatprep.subr.bf16.mxu1 %v6681_v42 }
 0x32b   : > { %5564 = vmatmul.mubr.bf16.gmra.mrb[4].mxu1 %v4850_v5 }
 0x32c   : > { %5601 = vmatpush3.bf16.msra.mxu1 %v6681_v42  ;;  %5587 = vmatprep.mubr.bf16.mxu1 %v4862_v51 }
 0x32d   : > { %5594 = vmatprep.subr.bf16.mxu1 %v6691_v2 }
 0x330   : > { %5602 = vmatpush3.bf16.msra.mxu1 %v6691_v2 }
 0x331   : > { %5595 = vmatprep.subr.bf16.mxu1 %v6701_v14 }
 0x334   : > { %5603 = vmatpush3.bf16.msra.mxu1 %v6701_v14 }
 0x335   : > { %5596 = vmatprep.subr.bf16.mxu1 %v6720_v11 }
 0x338   : > { %5604 = vmatpush3.bf16.msra.mxu1 %v6720_v11  ;;  %v4859_v11 = vld [vmem:[%s6987_s4] ss:$0 sm:$0xff] }
 0x339   : > { %5597 = vmatprep.subr.bf16.mxu1 %v6735_v57 }
 0x33c   : > { %5605 = vmatpush3.bf16.msra.mxu1 %v6735_v57 }
 0x33d   : > { %5598 = vmatprep.subr.bf16.mxu1 %v6754_v3 }
 0x340   : > { %5606 = vmatpush3.bf16.msra.mxu1 %v6754_v3 }
 0x343   : > { %5588 = vmatmul.mubr.bf16.vlgmr.msra.gmra.mrb[4].mxu1 %v4863_v50 }
 0x370   : > { %v5585_v42 = vpop.f32.mrb[8].mxu0 }
 0x371   : > { %v4437_v2 = vpop.f32.mrb[9].mxu0 }
 0x372   : > { %v5586_v10 = vpop.f32.mrb[10].mxu0 }
 0x373   : > { %v4440_v14 = vpop.f32.mrb[11].mxu0 }
 0x3f6   : > { %v5561_v13 = vpop.f32.mrb[0].mxu1 }
 0x3f7   : > { %v5607_v28 = vadd.f32 %v5561_v13, %v4859_v11  ;;  %v4253_v57 = vpop.f32.mrb[1].mxu1 }
 0x3f8   : > { %v5609_v56 = vadd.f32 %v4859_v11, %v4253_v57  ;;  %v5562_v23 = vpop.f32.mrb[2].mxu1 }
 0x3f9   : > { %v5611_v3 = vadd.f32 %v5562_v23, %v4859_v11  ;;  %v5608_v15 = vadd.f32 %v5607_v28, %v5585_v42  ;;  %v4256_v16 = vpop.f32.mrb[3].mxu1 }
 0x3fa   : > { %v5613_v17 = vadd.f32 %v4859_v11, %v4256_v16  ;;  %v5610_v18 = vadd.f32 %v5609_v56, %v4437_v2 }
 0x3fb   : > { %v4485_v19 = vadd.f32 %v5608_v15, %v4872_v53  ;;  %v5612_v52 = vadd.f32 %v5611_v3, %v5586_v10 }
 0x3fc   : > { %v4483_v25 = vadd.f32 %v5610_v18, %v4872_v53  ;;  %v5614_v26 = vadd.f32 %v5613_v17, %v4440_v14 }
 0x3fd   : > { %v4486_v29 = vadd.f32 %v5612_v52, %v4872_v53  ;;  %v4493_v35 = vmax.f32 %v4485_v19, 0.0 }
 0x3fe   : > { %v4484_v12 = vadd.f32 %v5614_v26, %v4872_v53  ;;  %v4491_v36 = vmax.f32 %v4483_v25, 0.0 }
 0x3ff   : > { %v4494_v31 = vmax.f32 %v4486_v29, 0.0 }
 0x400   : > { %v4492_v39 = vmax.f32 %v4484_v12, 0.0 }
 0x401   : > { %v4892_v41 = vpack.c.bf16 %v4494_v31, %v4493_v35 }
 0x402   : > { %v4887_v59 = vpack.c.bf16 %v4492_v39, %v4491_v36 }
 0x403   : > { %4904 = vst [vmem:[%s278_s19 + $0x8] sm:$0xff] %v4892_v41  }
 0x404   : > { %4888 = vst [vmem:[%s278_s19] sm:$0xff] %v4887_v59  }
 0x416   : > { %v5589_v40 = vpop.f32.mrb[4].mxu1 }
 0x417   : > { %v5615_v43 = vadd.f32 %v5589_v40, %v4859_v11  ;;  %v4453_v45 = vpop.f32.mrb[5].mxu1 }
 0x418   : > { %v5616_v32 = vadd.f32 %v4859_v11, %v4453_v45  ;;  %v5590_v46 = vpop.f32.mrb[6].mxu1 }
 0x419   : > { %v4489_v47 = vadd.f32 %v5615_v43, %v4872_v53  ;;  %v5617_v48 = vadd.f32 %v5590_v46, %v4859_v11  ;;  %v4456_v49 = vpop.f32.mrb[7].mxu1 }
 0x41a   : > { %v4487_v58 = vadd.f32 %v5616_v32, %v4872_v53  ;;  %v5618_v60 = vadd.f32 %v4859_v11, %v4456_v49 }
 0x41b   : > { %v4490_v61 = vadd.f32 %v5617_v48, %v4872_v53  ;;  %v4497_v55 = vmax.f32 %v4489_v47, 0.0 }
 0x41c   : > { %v4488_v62 = vadd.f32 %v5618_v60, %v4872_v53  ;;  %v4495_v37 = vmax.f32 %v4487_v58, 0.0 }
 0x41d   : > { %v4498_v7 = vmax.f32 %v4490_v61, 0.0 }
 0x41e   : > { %v4496_v63 = vmax.f32 %v4488_v62, 0.0 }
 0x41f   : > { %v4902_v8 = vpack.c.bf16 %v4498_v7, %v4497_v55 }
 0x420   : > { %v4897_v38 = vpack.c.bf16 %v4496_v63, %v4495_v37 }
 0x421   : > { %4906 = vst [vmem:[%s278_s19 + $0x18] sm:$0xff] %v4902_v8  }
 0x422   : > { %4905 = vst [vmem:[%s278_s19 + $0x10] sm:$0xff] %v4897_v38  }
 0x423 PF: > { %s17_s24 = sadd.s32 1, %s5931_s24  }
 0x424   : > { %p14_p4 = scmp.ge.s32.totalorder %s17_s24, 4  }
 0x426   :  { %16 = sbr.rel (!%p14_p4) target bundleno = 1 (0x1), region = 81 }

</bundles_post_ra>
